<compile_context>
chip_gen: v5e
topology: v5e:2x2
jax: 0.10.0
libtpu: 0.0.40
codegen_flags: <defaults>
</compile_context>

<pallas_src>
import functools

import jax
import jax.numpy as jnp
from jax.experimental import pallas as pl
from jax.experimental.pallas import tpu as pltpu

LN_EPS = 1e-5
LANE = 128


# ---------------------------------------------------------------------------
# In-kernel math helpers
# ---------------------------------------------------------------------------
def _layernorm(x, gamma, beta):
    # One-pass LN: E[x], E[x^2] -> halves the cross-lane reductions.
    mu = jnp.mean(x, axis=-1, keepdims=True)
    msq = jnp.mean(x * x, axis=-1, keepdims=True)
    var = msq - mu * mu
    return (x - mu) * jax.lax.rsqrt(var + LN_EPS) * gamma + beta


def _gelu(x):
    # tanh-approx GELU routes the transcendental to the (otherwise idle) EUP.
    # Numerics differ from nn.GELU() exact erf by <~3e-3 abs.
    return jax.nn.gelu(x, approximate=True)


# ---------------------------------------------------------------------------
# Kernel 1: patch embedding  (B, P, patch_dim) @ (patch_dim, D) + b
# ---------------------------------------------------------------------------
def _patch_embed_kernel(p_ref, w_ref, b_ref, o_ref):
    o_ref[0] = (
        jnp.dot(p_ref[0].astype(jnp.bfloat16), w_ref[...],
                preferred_element_type=jnp.float32)
        + b_ref[...]
    )


# ---------------------------------------------------------------------------
# Kernel 2: fused mixer stack + pooled classifier head
#   grid = (batch_chunks, layers); activation resident in VMEM scratch.
# ---------------------------------------------------------------------------
def _mixer_kernel(
    embed_ref,
    ln1_g_ref, ln1_b_ref, ln2_g_ref, ln2_b_ref,
    tw1_ref, tb1_ref, tw2_ref, tb2_ref,
    cw1_ref, cb1_ref, cw2_ref, cb2_ref,
    pool_ref, cls_w_ref, cls_b_ref,
    out_ref,
    h_ref,
    *, batch_chunk, num_patches,
):
    layer = pl.program_id(1)

    # ---- load the embedded activation for this chunk at the first layer ----
    @pl.when(layer == 0)
    def _init():
        h_ref[...] = embed_ref[0]

    x = h_ref[...]                                           # (Bc*P, D) f32

    # ---- token mixer: shared (H,P)/(P,H) weights, per-batch-element slices ----
    pre = _layernorm(x, ln1_g_ref[0], ln1_b_ref[0]).astype(jnp.bfloat16)
    tw1 = tw1_ref[0]                                          # (H, P) bf16
    tb1 = tb1_ref[0]                                          # (H, 1) f32
    tw2 = tw2_ref[0]                                          # (P, H) bf16
    tb2 = tb2_ref[0]                                          # (P, 1) f32
    parts = []
    for b in range(batch_chunk):                              # static, small
        pre_b = pre[b * num_patches:(b + 1) * num_patches, :]          # (P, D)
        u = jnp.dot(tw1, pre_b, preferred_element_type=jnp.float32) + tb1
        u = _gelu(u).astype(jnp.bfloat16)                               # (H, D)
        v = jnp.dot(tw2, u, preferred_element_type=jnp.float32) + tb2   # (P, D)
        parts.append(v)
    tm_delta = parts[0] if batch_chunk == 1 else jnp.concatenate(parts, axis=0)
    tm = x + tm_delta                                         # residual (f32)

    # ---- channel mixer: (Bc*P, D) @ (D, Hc) @ (Hc, D) ----
    post = _layernorm(tm, ln2_g_ref[0], ln2_b_ref[0]).astype(jnp.bfloat16)
    c1 = _gelu(
        jnp.dot(post, cw1_ref[0], preferred_element_type=jnp.float32)
        + cb1_ref[0]
    ).astype(jnp.bfloat16)
    cm = jnp.dot(c1, cw2_ref[0], preferred_element_type=jnp.float32) + cb2_ref[0]

    h_new = tm + cm
    h_ref[...] = h_new

    # ---- pooled classifier head, last layer step only ----
    @pl.when(layer == pl.num_programs(1) - 1)
    def _head():
        # mean over patches as a tiny exact f32 matmul (pool rows are 1/P)
        pooled = jnp.dot(pool_ref[...], h_new,
                         preferred_element_type=jnp.float32)            # (Bc, D)
        out_ref[0] = (
            jnp.dot(pooled.astype(jnp.bfloat16), cls_w_ref[...],
                    preferred_element_type=jnp.float32)
            + cls_b_ref[...]
        ).astype(out_ref.dtype)


# ---------------------------------------------------------------------------
# BlockSpec helpers
# ---------------------------------------------------------------------------
def _per_layer_spec(shape):
    shape = tuple(shape)
    zeros = (0,) * len(shape)

    def idx(c, l):
        return (l,) + zeros

    return pl.BlockSpec((1,) + shape, idx)


def _const_spec(shape):
    shape = tuple(shape)
    zeros = (0,) * len(shape)

    def idx(c, l):
        return zeros

    return pl.BlockSpec(shape, idx)


# ---------------------------------------------------------------------------
# Model glue: patch rearrange, params, one-time preprocessing
# ---------------------------------------------------------------------------
def to_patches(x, p1, p2):
    # einops: 'b c (h p1) (w p2) -> b (h w) (p1 p2 c)'
    B, C, H, W = x.shape
    h, w = H // p1, W // p2
    x = x.reshape(B, C, h, p1, w, p2)
    x = x.transpose(0, 2, 4, 3, 5, 1)
    return x.reshape(B, h * w, p1 * p2 * C)


def init_params(key, *, patch_dim, dim, num_patches, layers, num_classes):
    k = jax.random.split(key, 12)

    def w(kk, shape, scale=0.02):
        return jax.random.normal(kk, shape, jnp.float32) * scale

    return dict(
        pe_w=w(k[0], (patch_dim, dim)),
        pe_b=w(k[1], (1, dim), 0.01),
        ln1_g=jnp.ones((layers, 1, dim), jnp.float32),
        ln1_b=jnp.zeros((layers, 1, dim), jnp.float32),
        ln2_g=jnp.ones((layers, 1, dim), jnp.float32),
        ln2_b=jnp.zeros((layers, 1, dim), jnp.float32),
        # token-mixer weights in PyTorch (out_features, in_features) layout:
        # exactly the orientation the kernel's (H,P)@(P,D) / (P,H)@(H,D) dots need.
        tw1=w(k[2], (layers, dim, num_patches)),
        tb1=w(k[3], (layers, dim, 1), 0.01),
        tw2=w(k[4], (layers, num_patches, dim)),
        tb2=w(k[5], (layers, num_patches, 1), 0.01),
        # channel-mixer weights pre-transposed to (in, out)
        cw1=w(k[6], (layers, dim, dim)),
        cb1=w(k[7], (layers, 1, dim), 0.01),
        cw2=w(k[8], (layers, dim, dim)),
        cb2=w(k[9], (layers, 1, dim), 0.01),
        cls_w=w(k[10], (dim, num_classes)),
        cls_b=w(k[11], (1, num_classes), 0.01),
    )


def prepare_params(params, *, num_patches, batch_chunk):
    """One-time preprocessing (NOT per forward call):
    bf16 weight casts, lane-padded classifier, per-chunk pooling matrix."""
    P = num_patches
    Bc = batch_chunk
    D = params["pe_w"].shape[1]
    nc = params["cls_w"].shape[1]
    ncp = max(LANE, ((nc + LANE - 1) // LANE) * LANE)

    cls_w = jnp.zeros((D, ncp), jnp.float32).at[:, :nc].set(params["cls_w"])
    cls_b = jnp.zeros((1, ncp), jnp.float32).at[:, :nc].set(params["cls_b"])
    # block-diagonal per-chunk mean-pooling matrix (Bc, Bc*P), tiny constant
    pool = jnp.kron(jnp.eye(Bc, dtype=jnp.float32),
                    jnp.full((1, P), 1.0 / P, jnp.float32))

    bf = jnp.bfloat16
    return dict(
        pe_w=params["pe_w"].astype(bf), pe_b=params["pe_b"],
        ln1_g=params["ln1_g"], ln1_b=params["ln1_b"],
        ln2_g=params["ln2_g"], ln2_b=params["ln2_b"],
        tw1=params["tw1"].astype(bf), tb1=params["tb1"],
        tw2=params["tw2"].astype(bf), tb2=params["tb2"],
        cw1=params["cw1"].astype(bf), cb1=params["cb1"],
        cw2=params["cw2"].astype(bf), cb2=params["cb2"],
        pool=pool, cls_w=cls_w.astype(bf), cls_b=cls_b,
    )


# ---------------------------------------------------------------------------
# Forward pass
# ---------------------------------------------------------------------------
def mlp_mixer_forward(x, prep, *, patch_size, num_classes, batch_chunk=None):
    p1, p2 = patch_size
    patches = to_patches(x, p1, p2)                 # (B, P, patch_dim)
    B, P, patch_dim = patches.shape
    D = prep["pe_w"].shape[1]
    L, H, _ = prep["tw1"].shape
    Hc = prep["cw1"].shape[2]
    ncp = prep["cls_w"].shape[1]

    # Chunking: fold the whole batch into one chunk at tiny sizes (bigger MXU M
    # dim); for real batches on v7x pick Bc = B // 2 (>= 8) so the "parallel"
    # chunk axis uses both TensorCores.
    Bc = batch_chunk if batch_chunk is not None else B
    assert B % Bc == 0, "batch must be divisible by batch_chunk"
    n_chunks = B // Bc

    # ---- patch embedding: separate small pallas_call so patches/pe_w are not
    #      resident in VMEM for all L mixer steps ----
    embed = pl.pallas_call(
        _patch_embed_kernel,
        out_shape=jax.ShapeDtypeStruct((B, P, D), jnp.float32),
        grid=(B,),
        in_specs=[
            pl.BlockSpec((1, P, patch_dim), lambda b: (b, 0, 0)),
            pl.BlockSpec((patch_dim, D), lambda b: (0, 0)),
            pl.BlockSpec((1, D), lambda b: (0, 0)),
        ],
        out_specs=pl.BlockSpec((1, P, D), lambda b: (b, 0, 0)),
        compiler_params=pltpu.CompilerParams(dimension_semantics=("parallel",)),
    )(patches, prep["pe_w"], prep["pe_b"])

    embed_chunks = embed.reshape(n_chunks, Bc * P, D)

    # ---- explicit VMEM budget (double-buffered per-layer blocks + consts) ----
    bf16, f32 = 2, 4
    per_layer = ((H * P + P * H + D * Hc + Hc * D) * bf16
                 + (H + P + Hc + 4 * D) * f32)
    est = (2 * per_layer                       # double-buffered layer weights
           + 2 * Bc * P * D * f32              # embed chunk block
           + Bc * Bc * P * f32                 # pool matrix
           + D * ncp * bf16 + ncp * f32        # classifier weights
           + 2 * Bc * ncp * f32                # output block
           + Bc * P * D * f32)                 # resident activation scratch
    vmem_limit = int(min(max(2 * est, 8 << 20), 64 << 20))

    in_specs = [
        pl.BlockSpec((1, Bc * P, D), lambda c, l: (c, 0, 0)),   # embedded acts
        _per_layer_spec((1, D)), _per_layer_spec((1, D)),       # ln1 g/b
        _per_layer_spec((1, D)), _per_layer_spec((1, D)),       # ln2 g/b
        _per_layer_spec((H, P)), _per_layer_spec((H, 1)),       # tw1 / tb1
        _per_layer_spec((P, H)), _per_layer_spec((P, 1)),       # tw2 / tb2
        _per_layer_spec((D, Hc)), _per_layer_spec((1, Hc)),     # cw1 / cb1
        _per_layer_spec((Hc, D)), _per_layer_spec((1, D)),      # cw2 / cb2
        _const_spec((Bc, Bc * P)),                              # pool matrix
        _const_spec((D, ncp)), _const_spec((1, ncp)),           # classifier
    ]

    out = pl.pallas_call(
        functools.partial(_mixer_kernel, batch_chunk=Bc, num_patches=P),
        out_shape=jax.ShapeDtypeStruct((n_chunks, Bc, ncp), jnp.float32),
        grid=(n_chunks, L),
        in_specs=in_specs,
        out_specs=pl.BlockSpec((1, Bc, ncp), lambda c, l: (c, 0, 0)),
        scratch_shapes=[pltpu.VMEM((Bc * P, D), jnp.float32)],   # resident acts
        compiler_params=pltpu.CompilerParams(
            dimension_semantics=("parallel", "arbitrary"),
            vmem_limit_bytes=vmem_limit),
    )(
        embed_chunks,
        prep["ln1_g"], prep["ln1_b"], prep["ln2_g"], prep["ln2_b"],
        prep["tw1"], prep["tb1"], prep["tw2"], prep["tb2"],
        prep["cw1"], prep["cb1"], prep["cw2"], prep["cb2"],
        prep["pool"], prep["cls_w"], prep["cls_b"],
    )
    return out.reshape(B, ncp)[:, :num_classes]


# ---------------------------------------------------------------------------
# Pure-JAX reference (f32, exact erf GELU — matches the PyTorch module)
# ---------------------------------------------------------------------------
def reference_forward(x, params, *, patch_size):
    def ln(v, g, b):
        mu = jnp.mean(v, axis=-1, keepdims=True)
        var = jnp.mean((v - mu) ** 2, axis=-1, keepdims=True)
        return (v - mu) * jax.lax.rsqrt(var + LN_EPS) * g + b

    patches = to_patches(x, patch_size[0], patch_size[1])
    h = patches @ params["pe_w"] + params["pe_b"]
    L = params["tw1"].shape[0]
    for l in range(L):
        pre = ln(h, params["ln1_g"][l], params["ln1_b"][l])
        t = jnp.swapaxes(pre, 1, 2)                              # (B, D, P)
        t = jax.nn.gelu(t @ params["tw1"][l].T + params["tb1"][l][:, 0],
                        approximate=False)
        t = t @ params["tw2"][l].T + params["tb2"][l][:, 0]
        tm = jnp.swapaxes(t, 1, 2) + h
        post = ln(tm, params["ln2_g"][l], params["ln2_b"][l])
        cm = (jax.nn.gelu(post @ params["cw1"][l] + params["cb1"][l],
                          approximate=False)
              @ params["cw2"][l] + params["cb2"][l])
        h = cm + tm
    pooled = jnp.mean(h, axis=1)
    return pooled @ params["cls_w"] + params["cls_b"]


# ---------------------------------------------------------------------------
if __name__ == "__main__":
    # Small config consistent with MLPMixer.__init__:
    #   input_size=(16,16), patch_size=(4,4) -> num_patches=16, patch_dim=48
    #   dim=32, img_channel=3, layers=2, num_classes=12
    input_size = (16, 16)
    patch_size = (4, 4)
    dim = 32
    img_channel = 3
    layers = 2
    num_classes = 12
    batch = 2

    num_patches = (input_size[0] // patch_size[0]) * (input_size[1] // patch_size[1])
    patch_dim = img_channel * patch_size[0] * patch_size[1]

    key = jax.random.PRNGKey(0)
    kx, kp = jax.random.split(key)
    x = jax.random.normal(kx, (batch, img_channel, *input_size), jnp.float32)

    params = init_params(kp, patch_dim=patch_dim, dim=dim,
                         num_patches=num_patches, layers=layers,
                         num_classes=num_classes)

    # One-time parameter packing (bf16 casts, pooling matrix, padded head).
    batch_chunk = batch   # fold whole (tiny) batch into one chunk; B//2 on v7x
    prep = jax.tree_util.tree_map(
        jax.block_until_ready,
        prepare_params(params, num_patches=num_patches, batch_chunk=batch_chunk))

    fwd = jax.jit(functools.partial(
        mlp_mixer_forward, patch_size=patch_size,
        num_classes=num_classes, batch_chunk=batch_chunk))
    out = jax.block_until_ready(fwd(x, prep))

    ref = reference_forward(x, params, patch_size=patch_size)
    assert out.shape == (batch, num_classes), out.shape
    max_diff = float(jnp.max(jnp.abs(out - ref)))
    # bf16 matmul operands + tanh GELU vs f32 exact-erf reference -> loosened tol
    assert jnp.allclose(out, ref, rtol=2e-2, atol=2e-2), f"max abs diff {max_diff}"

    print("KERNEL_OK")
</pallas_src>

<mosaic_0001>
module attributes {stable_mosaic.version = 11 : i64} {
  func.func @_patch_embed_kernel(%arg0: i32, %arg1: memref<1x16x48xf32, #tpu.memory_space<vmem>>, %arg2: memref<48x32xbf16, #tpu.memory_space<vmem>>, %arg3: memref<1x32xf32, #tpu.memory_space<vmem>>, %arg4: memref<1x16x32xf32, #tpu.memory_space<vmem>>) attributes {dimension_semantics = [#tpu.dimension_semantics<parallel>], iteration_bounds = array<i64: 2>, scalar_prefetch = 0 : i64, scratch_operands = 0 : i64, tpu.core_type = #tpu.core_type<tc>, window_params = [{transform_indices = @transform_0, window_bounds = array<i64: 1, 16, 48>}, {pipeline_mode = #tpu.pipeline_mode<synchronous>, transform_indices = @transform_1, window_bounds = array<i64: 48, 32>}, {pipeline_mode = #tpu.pipeline_mode<synchronous>, transform_indices = @transform_2, window_bounds = array<i64: 1, 32>}, {transform_indices = @transform_3, window_bounds = array<i64: 1, 16, 32>}]} {
    %c0 = arith.constant 0 : index
    %c0_0 = arith.constant 0 : index
    %c0_1 = arith.constant 0 : index
    %0 = vector.load %arg1[%c0, %c0_0, %c0_1] : memref<1x16x48xf32, #tpu.memory_space<vmem>>, vector<1x16x48xf32>
    %1 = vector.shape_cast %0 : vector<1x16x48xf32> to vector<16x48xf32>
    %2 = arith.truncf %1 : vector<16x48xf32> to vector<16x48xbf16>
    %c0_2 = arith.constant 0 : index
    %c0_3 = arith.constant 0 : index
    %3 = vector.load %arg2[%c0_2, %c0_3] : memref<48x32xbf16, #tpu.memory_space<vmem>>, vector<48x32xbf16>
    %cst = arith.constant dense<0.000000e+00> : vector<16x32xf32>
    %4 = tpu.matmul %2, %3, %cst {dimension_numbers = #tpu.dot_dimension_numbers<[1], [0], [0], [1], [0, 0, 1, 1], [], []>} : vector<16x48xbf16>, vector<48x32xbf16>, vector<16x32xf32> -> vector<16x32xf32>
    %c0_4 = arith.constant 0 : index
    %c0_5 = arith.constant 0 : index
    %5 = vector.load %arg3[%c0_4, %c0_5] : memref<1x32xf32, #tpu.memory_space<vmem>>, vector<1x32xf32>
    %6 = vector.broadcast %5 : vector<1x32xf32> to vector<16x32xf32>
    %7 = arith.addf %4, %6 : vector<16x32xf32>
    %c0_6 = arith.constant 0 : index
    %c0_7 = arith.constant 0 : index
    %c0_8 = arith.constant 0 : index
    %8 = vector.load %arg4[%c0_6, %c0_7, %c0_8] : memref<1x16x32xf32, #tpu.memory_space<vmem>>, vector<1x16x32xf32>
    %9 = vector.shape_cast %8 : vector<1x16x32xf32> to vector<16x32xf32>
    %10 = vector.shape_cast %7 : vector<16x32xf32> to vector<1x16x32xf32>
    tpu.vector_store %arg4[%c0_6, %c0_7, %c0_8], %10 {strides = array<i32>} : memref<1x16x32xf32, #tpu.memory_space<vmem>>, vector<1x16x32xf32>,
    return
  }
  func.func @transform_0(%arg0: i32) -> (i32, i32, i32) {
    %c0_i32 = arith.constant 0 : i32
    %c0_i32_0 = arith.constant 0 : i32
    %c0_i32_1 = arith.constant 0 : i32
    return %arg0, %c0_i32, %c0_i32_0 : i32, i32, i32
  }
  func.func @transform_1(%arg0: i32) -> (i32, i32) {
    %c0_i32 = arith.constant 0 : i32
    %c0_i32_0 = arith.constant 0 : i32
    %c0_i32_1 = arith.constant 0 : i32
    return %c0_i32, %c0_i32_0 : i32, i32
  }
  func.func @transform_2(%arg0: i32) -> (i32, i32) {
    %c0_i32 = arith.constant 0 : i32
    %c0_i32_0 = arith.constant 0 : i32
    %c0_i32_1 = arith.constant 0 : i32
    return %c0_i32, %c0_i32_0 : i32, i32
  }
  func.func @transform_3(%arg0: i32) -> (i32, i32, i32) {
    %c0_i32 = arith.constant 0 : i32
    %c0_i32_0 = arith.constant 0 : i32
    %c0_i32_1 = arith.constant 0 : i32
    return %arg0, %c0_i32, %c0_i32_0 : i32, i32, i32
  }
}

module attributes {stable_mosaic.version = 11 : i64} {
  func.func @_mixer_kernel(%arg0: i32, %arg1: i32, %arg2: memref<1x32x32xf32, #tpu.memory_space<vmem>>, %arg3: memref<1x1x32xf32, #tpu.memory_space<vmem>>, %arg4: memref<1x1x32xf32, #tpu.memory_space<vmem>>, %arg5: memref<1x1x32xf32, #tpu.memory_space<vmem>>, %arg6: memref<1x1x32xf32, #tpu.memory_space<vmem>>, %arg7: memref<1x32x16xbf16, #tpu.memory_space<vmem>>, %arg8: memref<1x32x1xf32, #tpu.memory_space<vmem>>, %arg9: memref<1x16x32xbf16, #tpu.memory_space<vmem>>, %arg10: memref<1x16x1xf32, #tpu.memory_space<vmem>>, %arg11: memref<1x32x32xbf16, #tpu.memory_space<vmem>>, %arg12: memref<1x1x32xf32, #tpu.memory_space<vmem>>, %arg13: memref<1x32x32xbf16, #tpu.memory_space<vmem>>, %arg14: memref<1x1x32xf32, #tpu.memory_space<vmem>>, %arg15: memref<2x32xf32, #tpu.memory_space<vmem>>, %arg16: memref<32x128xbf16, #tpu.memory_space<vmem>>, %arg17: memref<1x128xf32, #tpu.memory_space<vmem>>, %arg18: memref<1x2x128xf32, #tpu.memory_space<vmem>>, %arg19: memref<32x32xf32, #tpu.memory_space<vmem>>) attributes {dimension_semantics = [#tpu.dimension_semantics<parallel>, #tpu.dimension_semantics<arbitrary>], iteration_bounds = array<i64: 1, 2>, scalar_prefetch = 0 : i64, scratch_operands = 1 : i64, tpu.core_type = #tpu.core_type<tc>, window_params = [{transform_indices = @transform_0, window_bounds = array<i64: 1, 32, 32>}, {transform_indices = @transform_1, window_bounds = array<i64: 1, 1, 32>}, {transform_indices = @transform_2, window_bounds = array<i64: 1, 1, 32>}, {transform_indices = @transform_3, window_bounds = array<i64: 1, 1, 32>}, {transform_indices = @transform_4, window_bounds = array<i64: 1, 1, 32>}, {transform_indices = @transform_5, window_bounds = array<i64: 1, 32, 16>}, {transform_indices = @transform_6, window_bounds = array<i64: 1, 32, 1>}, {transform_indices = @transform_7, window_bounds = array<i64: 1, 16, 32>}, {transform_indices = @transform_8, window_bounds = array<i64: 1, 16, 1>}, {transform_indices = @transform_9, window_bounds = array<i64: 1, 32, 32>}, {transform_indices = @transform_10, window_bounds = array<i64: 1, 1, 32>}, {transform_indices = @transform_11, window_bounds = array<i64: 1, 32, 32>}, {transform_indices = @transform_12, window_bounds = array<i64: 1, 1, 32>}, {pipeline_mode = #tpu.pipeline_mode<synchronous>, transform_indices = @transform_13, window_bounds = array<i64: 2, 32>}, {pipeline_mode = #tpu.pipeline_mode<synchronous>, transform_indices = @transform_14, window_bounds = array<i64: 32, 128>}, {pipeline_mode = #tpu.pipeline_mode<synchronous>, transform_indices = @transform_15, window_bounds = array<i64: 1, 128>}, {transform_indices = @transform_16, window_bounds = array<i64: 1, 2, 128>}]} {
    %c0_i32 = arith.constant 0 : i32
    %0 = arith.cmpi eq, %arg1, %c0_i32 : i32
    %1 = arith.extui %0 : i1 to i32
    %c0_i32_0 = arith.constant 0 : i32
    %2 = arith.cmpi ne, %1, %c0_i32_0 : i32
    scf.if %2 {
      %c0_68 = arith.constant 0 : index
      %c0_69 = arith.constant 0 : index
      %c0_70 = arith.constant 0 : index
      %143 = vector.load %arg2[%c0_68, %c0_69, %c0_70] : memref<1x32x32xf32, #tpu.memory_space<vmem>>, vector<1x32x32xf32>
      %144 = vector.shape_cast %143 : vector<1x32x32xf32> to vector<32x32xf32>
      %c0_71 = arith.constant 0 : index
      %c0_72 = arith.constant 0 : index
      %145 = vector.load %arg19[%c0_71, %c0_72] : memref<32x32xf32, #tpu.memory_space<vmem>>, vector<32x32xf32>
      tpu.vector_store %arg19[%c0_71, %c0_72], %144 {strides = array<i32>} : memref<32x32xf32, #tpu.memory_space<vmem>>, vector<32x32xf32>,
    } else {
    }
    %c0 = arith.constant 0 : index
    %c0_1 = arith.constant 0 : index
    %3 = vector.load %arg19[%c0, %c0_1] : memref<32x32xf32, #tpu.memory_space<vmem>>, vector<32x32xf32>
    %c0_2 = arith.constant 0 : index
    %c0_3 = arith.constant 0 : index
    %c0_4 = arith.constant 0 : index
    %4 = vector.load %arg3[%c0_2, %c0_3, %c0_4] : memref<1x1x32xf32, #tpu.memory_space<vmem>>, vector<1x1x32xf32>
    %5 = vector.shape_cast %4 : vector<1x1x32xf32> to vector<1x32xf32>
    %c0_5 = arith.constant 0 : index
    %c0_6 = arith.constant 0 : index
    %c0_7 = arith.constant 0 : index
    %6 = vector.load %arg4[%c0_5, %c0_6, %c0_7] : memref<1x1x32xf32, #tpu.memory_space<vmem>>, vector<1x1x32xf32>
    %7 = vector.shape_cast %6 : vector<1x1x32xf32> to vector<1x32xf32>
    %cst = arith.constant dense<0.000000e+00> : vector<32xf32>
    %8 = vector.multi_reduction <add>, %3, %cst [1] : vector<32x32xf32> to vector<32xf32>
    %9 = vector.shape_cast %8 : vector<32xf32> to vector<32x1xf32>
    %cst_8 = arith.constant 3.200000e+01 : f32
    %10 = vector.broadcast %cst_8 : f32 to vector<32x1xf32>
    %11 = arith.divf %9, %10 : vector<32x1xf32>
    %12 = arith.mulf %3, %3 : vector<32x32xf32>
    %cst_9 = arith.constant dense<0.000000e+00> : vector<32xf32>
    %13 = vector.multi_reduction <add>, %12, %cst_9 [1] : vector<32x32xf32> to vector<32xf32>
    %14 = vector.shape_cast %13 : vector<32xf32> to vector<32x1xf32>
    %cst_10 = arith.constant 3.200000e+01 : f32
    %15 = vector.broadcast %cst_10 : f32 to vector<32x1xf32>
    %16 = arith.divf %14, %15 : vector<32x1xf32>
    %17 = arith.mulf %11, %11 : vector<32x1xf32>
    %18 = arith.subf %16, %17 : vector<32x1xf32>
    %19 = vector.broadcast %11 : vector<32x1xf32> to vector<32x32xf32>
    %20 = arith.subf %3, %19 : vector<32x32xf32>
    %cst_11 = arith.constant 9.99999974E-6 : f32
    %21 = vector.broadcast %cst_11 : f32 to vector<32x1xf32>
    %22 = arith.addf %18, %21 : vector<32x1xf32>
    %23 = math.rsqrt %22 : vector<32x1xf32>
    %24 = vector.broadcast %23 : vector<32x1xf32> to vector<32x32xf32>
    %25 = arith.mulf %20, %24 : vector<32x32xf32>
    %26 = vector.broadcast %5 : vector<1x32xf32> to vector<32x32xf32>
    %27 = arith.mulf %25, %26 : vector<32x32xf32>
    %28 = vector.broadcast %7 : vector<1x32xf32> to vector<32x32xf32>
    %29 = arith.addf %27, %28 : vector<32x32xf32>
    %30 = arith.truncf %29 : vector<32x32xf32> to vector<32x32xbf16>
    %c0_12 = arith.constant 0 : index
    %c0_13 = arith.constant 0 : index
    %c0_14 = arith.constant 0 : index
    %31 = vector.load %arg7[%c0_12, %c0_13, %c0_14] : memref<1x32x16xbf16, #tpu.memory_space<vmem>>, vector<1x32x16xbf16>
    %32 = vector.shape_cast %31 : vector<1x32x16xbf16> to vector<32x16xbf16>
    %c0_15 = arith.constant 0 : index
    %c0_16 = arith.constant 0 : index
    %c0_17 = arith.constant 0 : index
    %33 = vector.load %arg8[%c0_15, %c0_16, %c0_17] : memref<1x32x1xf32, #tpu.memory_space<vmem>>, vector<1x32x1xf32>
    %34 = vector.shape_cast %33 : vector<1x32x1xf32> to vector<32x1xf32>
    %c0_18 = arith.constant 0 : index
    %c0_19 = arith.constant 0 : index
    %c0_20 = arith.constant 0 : index
    %35 = vector.load %arg9[%c0_18, %c0_19, %c0_20] : memref<1x16x32xbf16, #tpu.memory_space<vmem>>, vector<1x16x32xbf16>
    %36 = vector.shape_cast %35 : vector<1x16x32xbf16> to vector<16x32xbf16>
    %c0_21 = arith.constant 0 : index
    %c0_22 = arith.constant 0 : index
    %c0_23 = arith.constant 0 : index
    %37 = vector.load %arg10[%c0_21, %c0_22, %c0_23] : memref<1x16x1xf32, #tpu.memory_space<vmem>>, vector<1x16x1xf32>
    %38 = vector.shape_cast %37 : vector<1x16x1xf32> to vector<16x1xf32>
    %39 = vector.extract_strided_slice %30 {offsets = [0, 0], sizes = [16, 32], strides = [1, 1]} : vector<32x32xbf16> to vector<16x32xbf16>
    %cst_24 = arith.constant dense<0.000000e+00> : vector<32x32xf32>
    %40 = tpu.matmul %32, %39, %cst_24 {dimension_numbers = #tpu.dot_dimension_numbers<[1], [0], [0], [1], [0, 0, 1, 1], [], []>} : vector<32x16xbf16>, vector<16x32xbf16>, vector<32x32xf32> -> vector<32x32xf32>
    %41 = vector.broadcast %34 : vector<32x1xf32> to vector<32x32xf32>
    %42 = arith.addf %40, %41 : vector<32x32xf32>
    %43 = arith.mulf %42, %42 : vector<32x32xf32>
    %44 = arith.mulf %42, %43 : vector<32x32xf32>
    %cst_25 = arith.constant 4.471500e-02 : f32
    %45 = vector.broadcast %cst_25 : f32 to vector<32x32xf32>
    %46 = arith.mulf %45, %44 : vector<32x32xf32>
    %47 = arith.addf %42, %46 : vector<32x32xf32>
    %cst_26 = arith.constant 0.797884583 : f32
    %48 = vector.broadcast %cst_26 : f32 to vector<32x32xf32>
    %49 = arith.mulf %48, %47 : vector<32x32xf32>
    %50 = math.tanh %49 : vector<32x32xf32>
    %cst_27 = arith.constant 1.000000e+00 : f32
    %51 = vector.broadcast %cst_27 : f32 to vector<32x32xf32>
    %52 = arith.addf %51, %50 : vector<32x32xf32>
    %cst_28 = arith.constant 5.000000e-01 : f32
    %53 = vector.broadcast %cst_28 : f32 to vector<32x32xf32>
    %54 = arith.mulf %53, %52 : vector<32x32xf32>
    %55 = arith.mulf %42, %54 : vector<32x32xf32>
    %56 = arith.truncf %55 : vector<32x32xf32> to vector<32x32xbf16>
    %cst_29 = arith.constant dense<0.000000e+00> : vector<16x32xf32>
    %57 = tpu.matmul %36, %56, %cst_29 {dimension_numbers = #tpu.dot_dimension_numbers<[1], [0], [0], [1], [0, 0, 1, 1], [], []>} : vector<16x32xbf16>, vector<32x32xbf16>, vector<16x32xf32> -> vector<16x32xf32>
    %58 = vector.broadcast %38 : vector<16x1xf32> to vector<16x32xf32>
    %59 = arith.addf %57, %58 : vector<16x32xf32>
    %60 = vector.extract_strided_slice %30 {offsets = [16, 0], sizes = [16, 32], strides = [1, 1]} : vector<32x32xbf16> to vector<16x32xbf16>
    %cst_30 = arith.constant dense<0.000000e+00> : vector<32x32xf32>
    %61 = tpu.matmul %32, %60, %cst_30 {dimension_numbers = #tpu.dot_dimension_numbers<[1], [0], [0], [1], [0, 0, 1, 1], [], []>} : vector<32x16xbf16>, vector<16x32xbf16>, vector<32x32xf32> -> vector<32x32xf32>
    %62 = vector.broadcast %34 : vector<32x1xf32> to vector<32x32xf32>
    %63 = arith.addf %61, %62 : vector<32x32xf32>
    %64 = arith.mulf %63, %63 : vector<32x32xf32>
    %65 = arith.mulf %63, %64 : vector<32x32xf32>
    %cst_31 = arith.constant 4.471500e-02 : f32
    %66 = vector.broadcast %cst_31 : f32 to vector<32x32xf32>
    %67 = arith.mulf %66, %65 : vector<32x32xf32>
    %68 = arith.addf %63, %67 : vector<32x32xf32>
    %cst_32 = arith.constant 0.797884583 : f32
    %69 = vector.broadcast %cst_32 : f32 to vector<32x32xf32>
    %70 = arith.mulf %69, %68 : vector<32x32xf32>
    %71 = math.tanh %70 : vector<32x32xf32>
    %cst_33 = arith.constant 1.000000e+00 : f32
    %72 = vector.broadcast %cst_33 : f32 to vector<32x32xf32>
    %73 = arith.addf %72, %71 : vector<32x32xf32>
    %cst_34 = arith.constant 5.000000e-01 : f32
    %74 = vector.broadcast %cst_34 : f32 to vector<32x32xf32>
    %75 = arith.mulf %74, %73 : vector<32x32xf32>
    %76 = arith.mulf %63, %75 : vector<32x32xf32>
    %77 = arith.truncf %76 : vector<32x32xf32> to vector<32x32xbf16>
    %cst_35 = arith.constant dense<0.000000e+00> : vector<16x32xf32>
    %78 = tpu.matmul %36, %77, %cst_35 {dimension_numbers = #tpu.dot_dimension_numbers<[1], [0], [0], [1], [0, 0, 1, 1], [], []>} : vector<16x32xbf16>, vector<32x32xbf16>, vector<16x32xf32> -> vector<16x32xf32>
    %79 = vector.broadcast %38 : vector<16x1xf32> to vector<16x32xf32>
    %80 = arith.addf %78, %79 : vector<16x32xf32>
    %81 = tpu.concatenate %59, %80 in 0 : vector<16x32xf32>, vector<16x32xf32> -> vector<32x32xf32>
    %82 = arith.addf %3, %81 : vector<32x32xf32>
    %c0_36 = arith.constant 0 : index
    %c0_37 = arith.constant 0 : index
    %c0_38 = arith.constant 0 : index
    %83 = vector.load %arg5[%c0_36, %c0_37, %c0_38] : memref<1x1x32xf32, #tpu.memory_space<vmem>>, vector<1x1x32xf32>
    %84 = vector.shape_cast %83 : vector<1x1x32xf32> to vector<1x32xf32>
    %c0_39 = arith.constant 0 : index
    %c0_40 = arith.constant 0 : index
    %c0_41 = arith.constant 0 : index
    %85 = vector.load %arg6[%c0_39, %c0_40, %c0_41] : memref<1x1x32xf32, #tpu.memory_space<vmem>>, vector<1x1x32xf32>
    %86 = vector.shape_cast %85 : vector<1x1x32xf32> to vector<1x32xf32>
    %cst_42 = arith.constant dense<0.000000e+00> : vector<32xf32>
    %87 = vector.multi_reduction <add>, %82, %cst_42 [1] : vector<32x32xf32> to vector<32xf32>
    %88 = vector.shape_cast %87 : vector<32xf32> to vector<32x1xf32>
    %cst_43 = arith.constant 3.200000e+01 : f32
    %89 = vector.broadcast %cst_43 : f32 to vector<32x1xf32>
    %90 = arith.divf %88, %89 : vector<32x1xf32>
    %91 = arith.mulf %82, %82 : vector<32x32xf32>
    %cst_44 = arith.constant dense<0.000000e+00> : vector<32xf32>
    %92 = vector.multi_reduction <add>, %91, %cst_44 [1] : vector<32x32xf32> to vector<32xf32>
    %93 = vector.shape_cast %92 : vector<32xf32> to vector<32x1xf32>
    %cst_45 = arith.constant 3.200000e+01 : f32
    %94 = vector.broadcast %cst_45 : f32 to vector<32x1xf32>
    %95 = arith.divf %93, %94 : vector<32x1xf32>
    %96 = arith.mulf %90, %90 : vector<32x1xf32>
    %97 = arith.subf %95, %96 : vector<32x1xf32>
    %98 = vector.broadcast %90 : vector<32x1xf32> to vector<32x32xf32>
    %99 = arith.subf %82, %98 : vector<32x32xf32>
    %cst_46 = arith.constant 9.99999974E-6 : f32
    %100 = vector.broadcast %cst_46 : f32 to vector<32x1xf32>
    %101 = arith.addf %97, %100 : vector<32x1xf32>
    %102 = math.rsqrt %101 : vector<32x1xf32>
    %103 = vector.broadcast %102 : vector<32x1xf32> to vector<32x32xf32>
    %104 = arith.mulf %99, %103 : vector<32x32xf32>
    %105 = vector.broadcast %84 : vector<1x32xf32> to vector<32x32xf32>
    %106 = arith.mulf %104, %105 : vector<32x32xf32>
    %107 = vector.broadcast %86 : vector<1x32xf32> to vector<32x32xf32>
    %108 = arith.addf %106, %107 : vector<32x32xf32>
    %109 = arith.truncf %108 : vector<32x32xf32> to vector<32x32xbf16>
    %c0_47 = arith.constant 0 : index
    %c0_48 = arith.constant 0 : index
    %c0_49 = arith.constant 0 : index
    %110 = vector.load %arg11[%c0_47, %c0_48, %c0_49] : memref<1x32x32xbf16, #tpu.memory_space<vmem>>, vector<1x32x32xbf16>
    %111 = vector.shape_cast %110 : vector<1x32x32xbf16> to vector<32x32xbf16>
    %cst_50 = arith.constant dense<0.000000e+00> : vector<32x32xf32>
    %112 = tpu.matmul %109, %111, %cst_50 {dimension_numbers = #tpu.dot_dimension_numbers<[1], [0], [0], [1], [0, 0, 1, 1], [], []>} : vector<32x32xbf16>, vector<32x32xbf16>, vector<32x32xf32> -> vector<32x32xf32>
    %c0_51 = arith.constant 0 : index
    %c0_52 = arith.constant 0 : index
    %c0_53 = arith.constant 0 : index
    %113 = vector.load %arg12[%c0_51, %c0_52, %c0_53] : memref<1x1x32xf32, #tpu.memory_space<vmem>>, vector<1x1x32xf32>
    %114 = vector.shape_cast %113 : vector<1x1x32xf32> to vector<1x32xf32>
    %115 = vector.broadcast %114 : vector<1x32xf32> to vector<32x32xf32>
    %116 = arith.addf %112, %115 : vector<32x32xf32>
    %117 = arith.mulf %116, %116 : vector<32x32xf32>
    %118 = arith.mulf %116, %117 : vector<32x32xf32>
    %cst_54 = arith.constant 4.471500e-02 : f32
    %119 = vector.broadcast %cst_54 : f32 to vector<32x32xf32>
    %120 = arith.mulf %119, %118 : vector<32x32xf32>
    %121 = arith.addf %116, %120 : vector<32x32xf32>
    %cst_55 = arith.constant 0.797884583 : f32
    %122 = vector.broadcast %cst_55 : f32 to vector<32x32xf32>
    %123 = arith.mulf %122, %121 : vector<32x32xf32>
    %124 = math.tanh %123 : vector<32x32xf32>
    %cst_56 = arith.constant 1.000000e+00 : f32
    %125 = vector.broadcast %cst_56 : f32 to vector<32x32xf32>
    %126 = arith.addf %125, %124 : vector<32x32xf32>
    %cst_57 = arith.constant 5.000000e-01 : f32
    %127 = vector.broadcast %cst_57 : f32 to vector<32x32xf32>
    %128 = arith.mulf %127, %126 : vector<32x32xf32>
    %129 = arith.mulf %116, %128 : vector<32x32xf32>
    %130 = arith.truncf %129 : vector<32x32xf32> to vector<32x32xbf16>
    %c0_58 = arith.constant 0 : index
    %c0_59 = arith.constant 0 : index
    %c0_60 = arith.constant 0 : index
    %131 = vector.load %arg13[%c0_58, %c0_59, %c0_60] : memref<1x32x32xbf16, #tpu.memory_space<vmem>>, vector<1x32x32xbf16>
    %132 = vector.shape_cast %131 : vector<1x32x32xbf16> to vector<32x32xbf16>
    %cst_61 = arith.constant dense<0.000000e+00> : vector<32x32xf32>
    %133 = tpu.matmul %130, %132, %cst_61 {dimension_numbers = #tpu.dot_dimension_numbers<[1], [0], [0], [1], [0, 0, 1, 1], [], []>} : vector<32x32xbf16>, vector<32x32xbf16>, vector<32x32xf32> -> vector<32x32xf32>
    %c0_62 = arith.constant 0 : index
    %c0_63 = arith.constant 0 : index
    %c0_64 = arith.constant 0 : index
    %134 = vector.load %arg14[%c0_62, %c0_63, %c0_64] : memref<1x1x32xf32, #tpu.memory_space<vmem>>, vector<1x1x32xf32>
    %135 = vector.shape_cast %134 : vector<1x1x32xf32> to vector<1x32xf32>
    %136 = vector.broadcast %135 : vector<1x32xf32> to vector<32x32xf32>
    %137 = arith.addf %133, %136 : vector<32x32xf32>
    %138 = arith.addf %82, %137 : vector<32x32xf32>
    %c0_65 = arith.constant 0 : index
    %c0_66 = arith.constant 0 : index
    %139 = vector.load %arg19[%c0_65, %c0_66] : memref<32x32xf32, #tpu.memory_space<vmem>>, vector<32x32xf32>
    tpu.vector_store %arg19[%c0_65, %c0_66], %138 {strides = array<i32>} : memref<32x32xf32, #tpu.memory_space<vmem>>, vector<32x32xf32>,
    %c1_i32 = arith.constant 1 : i32
    %140 = arith.cmpi eq, %arg1, %c1_i32 : i32
    %141 = arith.extui %140 : i1 to i32
    %c0_i32_67 = arith.constant 0 : i32
    %142 = arith.cmpi ne, %141, %c0_i32_67 : i32
    scf.if %142 {
      %c0_68 = arith.constant 0 : index
      %c0_69 = arith.constant 0 : index
      %143 = vector.load %arg15[%c0_68, %c0_69] : memref<2x32xf32, #tpu.memory_space<vmem>>, vector<2x32xf32>
      %cst_70 = arith.constant dense<0.000000e+00> : vector<2x32xf32>
      %144 = tpu.matmul %143, %138, %cst_70 {dimension_numbers = #tpu.dot_dimension_numbers<[1], [0], [0], [1], [0, 0, 1, 1], [], []>} : vector<2x32xf32>, vector<32x32xf32>, vector<2x32xf32> -> vector<2x32xf32>
      %145 = arith.truncf %144 : vector<2x32xf32> to vector<2x32xbf16>
      %c0_71 = arith.constant 0 : index
      %c0_72 = arith.constant 0 : index
      %146 = vector.load %arg16[%c0_71, %c0_72] : memref<32x128xbf16, #tpu.memory_space<vmem>>, vector<32x128xbf16>
      %cst_73 = arith.constant dense<0.000000e+00> : vector<2x128xf32>
      %147 = tpu.matmul %145, %146, %cst_73 {dimension_numbers = #tpu.dot_dimension_numbers<[1], [0], [0], [1], [0, 0, 1, 1], [], []>} : vector<2x32xbf16>, vector<32x128xbf16>, vector<2x128xf32> -> vector<2x128xf32>
      %c0_74 = arith.constant 0 : index
      %c0_75 = arith.constant 0 : index
      %148 = vector.load %arg17[%c0_74, %c0_75] : memref<1x128xf32, #tpu.memory_space<vmem>>, vector<1x128xf32>
      %149 = vector.broadcast %148 : vector<1x128xf32> to vector<2x128xf32>
      %150 = arith.addf %147, %149 : vector<2x128xf32>
      %c0_76 = arith.constant 0 : index
      %c0_77 = arith.constant 0 : index
      %c0_78 = arith.constant 0 : index
      %151 = vector.load %arg18[%c0_76, %c0_77, %c0_78] : memref<1x2x128xf32, #tpu.memory_space<vmem>>, vector<1x2x128xf32>
      %152 = vector.shape_cast %151 : vector<1x2x128xf32> to vector<2x128xf32>
      %153 = vector.shape_cast %150 : vector<2x128xf32> to vector<1x2x128xf32>
      tpu.vector_store %arg18[%c0_76, %c0_77, %c0_78], %153 {strides = array<i32>} : memref<1x2x128xf32, #tpu.memory_space<vmem>>, vector<1x2x128xf32>,
    } else {
    }
    return
  }
  func.func @transform_0(%arg0: i32, %arg1: i32) -> (i32, i32, i32) {
    %c0_i32 = arith.constant 0 : i32
    %c0_i32_0 = arith.constant 0 : i32
    %c0_i32_1 = arith.constant 0 : i32
    return %arg0, %c0_i32, %c0_i32_0 : i32, i32, i32
  }
  func.func @transform_1(%arg0: i32, %arg1: i32) -> (i32, i32, i32) {
    %c0_i32 = arith.constant 0 : i32
    %c0_i32_0 = arith.constant 0 : i32
    %c0_i32_1 = arith.constant 0 : i32
    return %arg1, %c0_i32, %c0_i32_0 : i32, i32, i32
  }
  func.func @transform_2(%arg0: i32, %arg1: i32) -> (i32, i32, i32) {
    %c0_i32 = arith.constant 0 : i32
    %c0_i32_0 = arith.constant 0 : i32
    %c0_i32_1 = arith.constant 0 : i32
    return %arg1, %c0_i32, %c0_i32_0 : i32, i32, i32
  }
  func.func @transform_3(%arg0: i32, %arg1: i32) -> (i32, i32, i32) {
    %c0_i32 = arith.constant 0 : i32
    %c0_i32_0 = arith.constant 0 : i32
    %c0_i32_1 = arith.constant 0 : i32
    return %arg1, %c0_i32, %c0_i32_0 : i32, i32, i32
  }
  func.func @transform_4(%arg0: i32, %arg1: i32) -> (i32, i32, i32) {
    %c0_i32 = arith.constant 0 : i32
    %c0_i32_0 = arith.constant 0 : i32
    %c0_i32_1 = arith.constant 0 : i32
    return %arg1, %c0_i32, %c0_i32_0 : i32, i32, i32
  }
  func.func @transform_5(%arg0: i32, %arg1: i32) -> (i32, i32, i32) {
    %c0_i32 = arith.constant 0 : i32
    %c0_i32_0 = arith.constant 0 : i32
    %c0_i32_1 = arith.constant 0 : i32
    return %arg1, %c0_i32, %c0_i32_0 : i32, i32, i32
  }
  func.func @transform_6(%arg0: i32, %arg1: i32) -> (i32, i32, i32) {
    %c0_i32 = arith.constant 0 : i32
    %c0_i32_0 = arith.constant 0 : i32
    %c0_i32_1 = arith.constant 0 : i32
    return %arg1, %c0_i32, %c0_i32_0 : i32, i32, i32
  }
  func.func @transform_7(%arg0: i32, %arg1: i32) -> (i32, i32, i32) {
    %c0_i32 = arith.constant 0 : i32
    %c0_i32_0 = arith.constant 0 : i32
    %c0_i32_1 = arith.constant 0 : i32
    return %arg1, %c0_i32, %c0_i32_0 : i32, i32, i32
  }
  func.func @transform_8(%arg0: i32, %arg1: i32) -> (i32, i32, i32) {
    %c0_i32 = arith.constant 0 : i32
    %c0_i32_0 = arith.constant 0 : i32
    %c0_i32_1 = arith.constant 0 : i32
    return %arg1, %c0_i32, %c0_i32_0 : i32, i32, i32
  }
  func.func @transform_9(%arg0: i32, %arg1: i32) -> (i32, i32, i32) {
    %c0_i32 = arith.constant 0 : i32
    %c0_i32_0 = arith.constant 0 : i32
    %c0_i32_1 = arith.constant 0 : i32
    return %arg1, %c0_i32, %c0_i32_0 : i32, i32, i32
  }
  func.func @transform_10(%arg0: i32, %arg1: i32) -> (i32, i32, i32) {
    %c0_i32 = arith.constant 0 : i32
    %c0_i32_0 = arith.constant 0 : i32
    %c0_i32_1 = arith.constant 0 : i32
    return %arg1, %c0_i32, %c0_i32_0 : i32, i32, i32
  }
  func.func @transform_11(%arg0: i32, %arg1: i32) -> (i32, i32, i32) {
    %c0_i32 = arith.constant 0 : i32
    %c0_i32_0 = arith.constant 0 : i32
    %c0_i32_1 = arith.constant 0 : i32
    return %arg1, %c0_i32, %c0_i32_0 : i32, i32, i32
  }
  func.func @transform_12(%arg0: i32, %arg1: i32) -> (i32, i32, i32) {
    %c0_i32 = arith.constant 0 : i32
    %c0_i32_0 = arith.constant 0 : i32
    %c0_i32_1 = arith.constant 0 : i32
    return %arg1, %c0_i32, %c0_i32_0 : i32, i32, i32
  }
  func.func @transform_13(%arg0: i32, %arg1: i32) -> (i32, i32) {
    %c0_i32 = arith.constant 0 : i32
    %c0_i32_0 = arith.constant 0 : i32
    %c0_i32_1 = arith.constant 0 : i32
    return %c0_i32, %c0_i32_0 : i32, i32
  }
  func.func @transform_14(%arg0: i32, %arg1: i32) -> (i32, i32) {
    %c0_i32 = arith.constant 0 : i32
    %c0_i32_0 = arith.constant 0 : i32
    %c0_i32_1 = arith.constant 0 : i32
    return %c0_i32, %c0_i32_0 : i32, i32
  }
  func.func @transform_15(%arg0: i32, %arg1: i32) -> (i32, i32) {
    %c0_i32 = arith.constant 0 : i32
    %c0_i32_0 = arith.constant 0 : i32
    %c0_i32_1 = arith.constant 0 : i32
    return %c0_i32, %c0_i32_0 : i32, i32
  }
  func.func @transform_16(%arg0: i32, %arg1: i32) -> (i32, i32, i32) {
    %c0_i32 = arith.constant 0 : i32
    %c0_i32_0 = arith.constant 0 : i32
    %c0_i32_1 = arith.constant 0 : i32
    return %arg0, %c0_i32, %c0_i32_0 : i32, i32, i32
  }
}

</mosaic_0001>

<bundles_post_ra>
// kernel: mlp_mixer_forward.2
= control target key start
LH: loop header
LB: loop body
LE: loop exit
PB: predicated region body
PF: predicated region fallthrough
CT: control target
= control target key end

     0   :  { %s345_s12 = smov 0   ;;  %s374_s0 = inlined_call_operand.vmem [shape: f32[2,16,48], index: 0, kind: input, shape index: {}]   ;;  %s375_s1 = inlined_call_operand.vmem [shape: bf16[48,32], index: 1, kind: input, shape index: {}]   ;;  %s376_s2 = inlined_call_operand.vmem [shape: f32[1,32], index: 2, kind: input, shape index: {}]   ;;  %s377_s3 = inlined_call_operand.vmem [shape: f32[2,16,32], index: 3, kind: output, shape index: {}]  }
   0x1 LB: > { %s279_s13 = sadd.s32 4294967295, %s323_s12   ;;  %p283_p0 = scmp.ge.s32.totalorder %s323_s12, 1  ;;  %s323_s12 = sphi %s345_s12, %s13_s12  }
   0x2   : > { %p137_p1 = scmp.lt.s32.totalorder %s323_s12, 3 }
   0x4   : > { %p138_p2 = pnand %p283_p0, %p137_p1 }
   0x5   : > { %p161_p3 = scmp.lt.s32.totalorder (!%p138_p2), %s279_s13, 1 }
   0x6   : > { %141 = sbr.rel (%p138_p2) target bundleno = 160 (0xa0), region = 32 }
   0xb   : > { %v307_v0 = vld [vmem:[%s375_s1 + $0x10] sm:$0xff]  ;;  %v306_v1 = vld [vmem:[%s375_s1 + $0x8] sm:$0xff]  ;;  %s379_s13 = smov (!%p161_p3, %s279_s13), 1  ;;  %v305_v2 = vld [vmem:[%s375_s1] sm:$0xff]  ;;  %vm203_vm0 = vcmask 392192   ;;  %vm221_vm1 = vcmask 261120  }
   0xc   : > { %212 = vmatpush.bf16.msra.mxu0 %v307_v0  ;;  %s303_s18 = sshll.u32 %s379_s13, 4  ;;  %v316_v6 = vld [vmem:[%s376_s2] ss:$0 sm:$0xff] }
   0xd   : > { %s165_s21 = scalar_lea.vmem %s374_s0, %s303_s18  ;;  %s170_s28 = scalar_lea.vmem %s377_s3, %s303_s18 }
   0xe   : > { %v172_v3 = vld [vmem:[%s165_s21] sm:$0xff]  ;;  %v173_v4 = vld [vmem:[%s165_s21 + $0x8] sm:$0xff] }
   0xf   : > { %v174_v5 = vpack.c.bf16 %v173_v4, %v172_v3 }
  0x10   : > { %213 = vmatpush.bf16.msra.mxu0 %v306_v1 }
  0x14   : > { %214 = vmatpush.bf16.msra.mxu0 %v305_v2 }
  0x17   : > { %300 = vmatmul.msk.bf16.vlgmr.msra.gmra.mxu0 %vm203_vm0, %v174_v5 }
  0x94   : > { %v216_v7 = vpop.f32.mrf.mxu0 }
  0x95   : > { %v217_v8 = vadd.f32 %v316_v6, %v216_v7 }
  0x97   : > { %222 = vst.msk [vmem:[%s170_s28] sm:$0xff] %vm221_vm1, %v217_v8 }
  0x9c   : > { %v218_v9 = vpop.f32.mrf.mxu0 }
  0x9d   : > { %v219_v10 = vadd.f32 %v316_v6, %v218_v9 }
  0x9f   : > { %223 = vst.msk [vmem:[%s170_s28 + $0x8] sm:$0xff] %vm221_vm1, %v219_v10 }
  0xa0 PF: > { %s13_s12 = sadd.s32 1, %s323_s12  }
  0xa1   : > { %p10_p4 = scmp.ge.s32.totalorder %s13_s12, 4  }
  0xa3   :  { %12 = sbr.rel (!%p10_p4) target bundleno = 1 (0x1), region = 62 }

// kernel: mlp_mixer_forward.3
= control target key start
LH: loop header
LB: loop body
LE: loop exit
PB: predicated region body
PF: predicated region fallthrough
CT: control target
= control target key end

     0   :  { %s2240_s0 = inlined_call_operand.vmem [shape: f32[1,32,32], index: 0, kind: input, shape index: {}]   ;;  %s2241_s1 = inlined_call_operand.vmem [shape: f32[2,1,32], index: 1, kind: input, shape index: {}]   ;;  %s2242_s2 = inlined_call_operand.vmem [shape: f32[2,1,32], index: 2, kind: input, shape index: {}]   ;;  %s2243_s3 = inlined_call_operand.vmem [shape: f32[2,1,32], index: 3, kind: input, shape index: {}]   ;;  %s2244_s4 = inlined_call_operand.vmem [shape: f32[2,1,32], index: 4, kind: input, shape index: {}]   ;;  %s2245_s5 = inlined_call_operand.vmem [shape: bf16[2,32,16], index: 5, kind: input, shape index: {}]   ;;  %s2246_s6 = inlined_call_operand.vmem [shape: f32[2,32,1], index: 6, kind: input, shape index: {}]   ;;  %s2247_s7 = inlined_call_operand.vmem [shape: bf16[2,16,32], index: 7, kind: input, shape index: {}]   ;;  %s2248_s8 = inlined_call_operand.vmem [shape: f32[2,16,1], index: 8, kind: input, shape index: {}]   ;;  %s2249_s9 = inlined_call_operand.vmem [shape: bf16[2,32,32], index: 9, kind: input, shape index: {}]   ;;  %s2250_s10 = inlined_call_operand.vmem [shape: f32[2,1,32], index: 10, kind: input, shape index: {}]   ;;  %s2251_s11 = inlined_call_operand.vmem [shape: bf16[2,32,32], index: 11, kind: input, shape index: {}]   ;;  %s2252_s12 = inlined_call_operand.vmem [shape: f32[2,1,32], index: 12, kind: input, shape index: {}]   ;;  %s2253_s13 = inlined_call_operand.vmem [shape: f32[2,32], index: 13, kind: input, shape index: {}]   ;;  %s2254_s14 = inlined_call_operand.vmem [shape: bf16[32,128], index: 14, kind: input, shape index: {}]   ;;  %s2255_s15 = inlined_call_operand.vmem [shape: f32[1,128], index: 15, kind: input, shape index: {}]   ;;  %s2256_s16 = inlined_call_operand.hbm [shape: f32[1,2,128], index: 16, kind: output, shape index: {}]  }
   0x1   :  { %2260 = sst [smem:[#allocation9_spill]] %s2240_s0 }
   0x2   :  { %2261 = sst [smem:[#allocation10_spill]] %s2245_s5 }
   0x3   :  { %2262 = sst [smem:[#allocation11_spill]] %s2246_s6 }
   0x4   :  { %2263 = sst [smem:[#allocation12_spill]] %s2248_s8 }
   0x5   :  { %2264 = sst [smem:[#allocation13_spill]] %s2253_s13 }
   0x6   :  { %2265 = sst [smem:[#allocation14_spill]] %s2255_s15 }
   0x7   :  { %2266 = sst [smem:[#allocation15_spill]] %s2256_s16 }
   0x8   :  { %21 = vsyncpa [#allocation4], 0  ;;  %s1917_s21 = smov 0   ;;  %s1919_s22 = smov 0  }
   0x9   :  { %s1921_s23 = smov 0  }
   0xa LB: > { %2267 = sst [smem:[#allocation6_spill]] %s1823_s22  ;;  %s36_s25 = sadd.s32 1, %s1823_s22  ;;  %s1827_s23 = sphi %s1921_s23, %s27_s23   ;;  %s1823_s22 = sphi %s1919_s22, %s2285_s22   ;;  %s1819_s21 = sphi %s1917_s21, %s2284_s21  }
   0xb   : > { %2268 = sst [smem:[#allocation7_spill]] %s1827_s23  ;;  %p37_p0 = scmp.ge.s32.totalorder %s36_s25, 2 }
   0xc   : > { %p1606_p1 = scmp.ge.s32.totalorder %s1827_s23, 1  ;;  %p583_p2 = scmp.lt.s32.totalorder %s1827_s23, 3 }
   0xd   : > { %s2287_s25 = smov (%p37_p0, %s36_s25), 0 }
   0xe   : > { %2269 = sst [smem:[#allocation8_spill]] %s2287_s25  ;;  %p584_p3 = pnand %p1606_p1, %p583_p2 }
   0xf   : > { %p681_p4 = scmp.lt.s32.totalorder (!%p584_p3), %s1819_s21, 1  ;;  %s2270_s5 = sld [smem:[#allocation10_spill]] (!%p584_p3) }
  0x10   : > { %587 = sbr.rel (%p584_p3) target bundleno = 1288 (0x508), region = 84  ;;  %s2271_s6 = sld [smem:[#allocation11_spill]] (!%p584_p3) }
  0x11   : > { %s2272_s8 = sld [smem:[#allocation12_spill]] (!%p584_p3)  ;;  %p1619_p5 = scmp.ne.s32.totalorder (!%p584_p3), %s1819_s21, 0 }
  0x15   : > { %s1940_s26 = scalar_select %p681_p4, %s1819_s21, 1 }
  0x16   : > { %s2273_s25 = sld [smem:[#allocation9_spill]] (!%p1619_p5) }
  0x17   : > { %s1673_s28 = sshll.u32 %s1940_s26, 4  ;;  %s1674_s22 = sshll.u32 %s1940_s26, 5 }
  0x18   : > { %s1963_s15 = scalar_lea.vmem %s2270_s5, %s1673_s28  ;;  %s1968_s30 = scalar_lea.vmem %s2271_s6, %s1674_s22 }
  0x19   : > { %s1675_s0 = sshll.u32 %s1940_s26, 3  ;;  %s1974_s19 = scalar_lea.vmem %s2272_s8, %s1673_s28 }
  0x1a   : > { %s1979_s27 = scalar_lea.vmem %s2247_s7, %s1675_s0  ;;  %s1984_s23 = scalar_lea.vmem %s2249_s9, %s1673_s28 }
  0x1b   : > { %s720_s22 = scalar_lea.vmem %s2250_s10, %s1940_s26  ;;  %s1993_s17 = scalar_lea.vmem %s2251_s11, %s1673_s28 }
  0x1c   : > { %s728_s24 = scalar_lea.vmem %s2252_s12, %s1940_s26  ;;  %733 = sbr.rel (%p1619_p5) target bundleno = 38 (0x26), region = 88 }
  0x21   : > { %v734_v0 = vld [vmem:[%s2273_s25] sm:$0xff]  ;;  %vm738_vm0 = vcmask 261120   ;;  %v735_v1 = vld [vmem:[%s2273_s25 + $0x8] sm:$0xff]  ;;  %v736_v2 = vld [vmem:[%s2273_s25 + $0x10] sm:$0xff] }
  0x22   : > { %739 = vst.msk [vmem:[#allocation2] sm:$0xff] %vm738_vm0, %v734_v0  ;;  %v737_v3 = vld [vmem:[%s2273_s25 + $0x18] sm:$0xff] }
  0x23   : > { %740 = vst.msk [vmem:[#allocation2 + $0x8] sm:$0xff] %vm738_vm0, %v735_v1 }
  0x24   : > { %741 = vst.msk [vmem:[#allocation2 + $0x10] sm:$0xff] %vm738_vm0, %v736_v2 }
  0x25   : > { %742 = vst.msk [vmem:[#allocation2 + $0x18] sm:$0xff] %vm738_vm0, %v737_v3 }
  0x26 PF: > { %vm749_vm1 = vcmask 261120   ;;  %v1829_v20 = vmov 32.0   ;;  %v875_v2 = vld [vmem:[%s1968_s30] sm:$0xff]  ;;  %s2274_s0 = scalar_lea.vmem %s2241_s1, %s1940_s26  ;;  %s2275_s5 = scalar_lea.vmem %s2242_s2, %s1940_s26  ;;  %vm919_vm15 = vcmask 130048  }
  0x27   : > { %1730 = vrcp.f32 %v1829_v20  ;;  %s2277_s13 = scalar_lea.vmem %s2244_s4, %s1940_s26  ;;  %p1658_p6 = scmp.ne.s32.totalorder %s1819_s21, 1 }
  0x28   : > { %s2278_s18 = sld [smem:[#allocation13_spill]] (!%p1658_p6) }
  0x29   : > { %v2012_v4 = vld [vmem:[#allocation2] sm:$0xff] }
  0x2a   : > { %v750_v6 = vsel %vm749_vm1, %v2012_v4, 0.0  ;;  %v773_v7 = vmul.f32 %v2012_v4, %v2012_v4  ;;  %v2022_v9 = vld [vmem:[#allocation2 + $0x8] sm:$0xff] }
  0x2b   : > { %v2014_v5 = vld [vmem:[#allocation2 + $0x10] sm:$0xff]  ;;  %751 = vadd.xlane.f32.xlu0 %v750_v6  ;;  %v774_v12 = vmul.f32 %v2022_v9, %v2022_v9  ;;  %v753_v13 = vsel %vm749_vm1, %v2022_v9, 0.0  ;;  %v1724_v6 = vld [vmem:[%s2274_s0] ss:$0 sm:$0xff] }
  0x2c   : > { %v756_v8 = vsel %vm749_vm1, %v2014_v5, 0.0  ;;  %v777_v10 = vsel %vm749_vm1, %v773_v7, 0.0  ;;  %v2025_v11 = vld [vmem:[#allocation2 + $0x18] sm:$0xff]  ;;  %v775_v16 = vmul.f32 %v2014_v5, %v2014_v5  ;;  %v1830_v7 = vmov 0  }
  0x2d   : > { %757 = vadd.xlane.f32.xlu2 %v756_v8  ;;  %778 = vadd.xlane.f32.xlu1 %v777_v10  ;;  %v759_v14 = vsel %vm749_vm1, %v2025_v11, 0.0  ;;  %v780_v15 = vsel %vm749_vm1, %v774_v12, 0.0  ;;  %v776_v17 = vmul.f32 %v2025_v11, %v2025_v11  ;;  %v1731_v21 = vpop.eup %1730 }
  0x2e   : > { %v783_v18 = vsel %vm749_vm1, %v775_v16, 0.0  ;;  %v763_v22 = vmul.f32 32.0, %v1731_v21  ;;  %vm767_vm2 = vweird.f32 %v1731_v21  ;;  %1723 = vset.pattern.permute.xlu1 %v1830_v7  ;;  %1722 = vset.pattern.permute.xlu0 %v1830_v7  ;;  %v1725_v16 = vld [vmem:[%s2275_s5] ss:$0 sm:$0xff]  ;;  %s2279_s5 = sld [smem:[#allocation14_spill]] (!%p1658_p6) }
  0x2f   : > { %v786_v19 = vsel %vm749_vm1, %v776_v17, 0.0  ;;  %1721 = vset.pattern.permute.xlu2 %v1830_v7 }
  0x30   : > { %v764_v23 = vsub.f32 1.0, %v763_v22 }
  0x32   : > { %v765_v24 = vmul.f32 %v1731_v21, %v764_v23 }
  0x33   : > { %754 = vadd.xlane.f32.xlu0 %v753_v13 }
  0x34   : > { %v766_v25 = vadd.f32 %v1731_v21, %v765_v24 }
  0x35   : > { %760 = vadd.xlane.f32.xlu2 %v759_v14  ;;  %781 = vadd.xlane.f32.xlu1 %v780_v15 }
  0x36   : > { %v2040_v26 = vsel %vm767_vm2, %v1731_v21, %v766_v25 }
  0x3b   : > { %784 = vadd.xlane.f32.xlu0 %v783_v18 }
  0x3d   : > { %787 = vadd.xlane.f32.xlu1 %v786_v19 }
  0x56   : > { %885 = vperm.xlu1 %1723, %v875_v2  }
  0x9e   : > { %v752_v27 = vpop.xlane.xlu0 %751 }
  0x9f   : > { %v769_v29 = vmul.f32 %v2040_v26, %v752_v27 }
  0xa0   : > { %v758_v28 = vpop.xlane.xlu2 %757  ;;  %v779_v30 = vpop.xlane.xlu1 %778 }
  0xa1   : > { %v793_v31 = vmul.f32 %v769_v29, %v769_v29  ;;  %v789_v32 = vmul.f32 %v779_v30, %v2040_v26  ;;  %v2047_v41 = vmul.f32 %v2040_v26, %v758_v28  ;;  %v801_v63 = vsub.f32 %v2012_v4, %v769_v29 }
  0xa3   : > { %v797_v33 = vsub.f32 %v789_v32, %v793_v31  ;;  %v795_v48 = vmul.f32 %v2047_v41, %v2047_v41  ;;  %v803_v32 = vsub.f32 %v2014_v5, %v2047_v41 }
  0xa5   : > { %v805_v34 = vadd.f32 1e-05, %v797_v33 }
  0xa6   : > { %v755_v35 = vpop.xlane.xlu0 %754 }
  0xa7   : > { %1732 = vrsqrt.f32 %v805_v34  ;;  %v770_v36 = vmul.f32 %v2040_v26, %v755_v35  ;;  %vm815_vm4 = vweird.f32 %v805_v34 }
  0xa8   : > { %v782_v37 = vpop.xlane.xlu1 %781  ;;  %v761_v38 = vpop.xlane.xlu2 %760 }
  0xa9   : > { %v794_v39 = vmul.f32 %v770_v36, %v770_v36  ;;  %v790_v40 = vmul.f32 %v782_v37, %v2040_v26  ;;  %v2050_v43 = vmul.f32 %v2040_v26, %v761_v38  ;;  %v802_v20 = vsub.f32 %v2022_v9, %v770_v36 }
  0xab   : > { %v798_v42 = vsub.f32 %v790_v40, %v794_v39  ;;  %v796_v49 = vmul.f32 %v2050_v43, %v2050_v43  ;;  %v804_v37 = vsub.f32 %v2025_v11, %v2050_v43 }
  0xad   : > { %v1733_v44 = vpop.eup %1732  ;;  %v806_v45 = vadd.f32 1e-05, %v798_v42  ;;  %v877_v42 = vld [vmem:[%s1968_s30 + $0x10] sm:$0xff] }
  0xae   : > { %v810_v46 = vmul.f32 %v1733_v44, %v805_v34  ;;  %v785_v47 = vpop.xlane.xlu0 %784  ;;  %vm816_vm3 = vweird.f32 %v1733_v44  ;;  %895 = vperm.xlu2 %1721, %v877_v42  }
  0xaf   : > { %1734 = vrsqrt.f32 %v806_v45  ;;  %v791_v50 = vmul.f32 %v785_v47, %v2040_v26  ;;  %vm817_vm5 = vmor %vm815_vm4, %vm816_vm3  ;;  %vm825_vm7 = vweird.f32 %v806_v45 }
  0xb0   : > { %v811_v51 = vmul.f32 %v1733_v44, %v810_v46  ;;  %v788_v52 = vpop.xlane.xlu1 %787 }
  0xb1   : > { %v799_v53 = vsub.f32 %v791_v50, %v795_v48  ;;  %v792_v54 = vmul.f32 %v788_v52, %v2040_v26  ;;  %v882_v48 = vld [vmem:[%s1974_s19 + $0x8] sm:$0xff] }
  0xb2   : > { %v812_v55 = vmul.f32 0.5, %v811_v51  ;;  %990 = vperm.xlu1 %1723, %v882_v48   ;;  %v1679_v51 = vld [vmem:[%s1963_s15] sm:$0xff] }
  0xb3   : > { %v807_v56 = vadd.f32 1e-05, %v799_v53  ;;  %v800_v57 = vsub.f32 %v792_v54, %v796_v49  ;;  %v876_v54 = vld [vmem:[%s1968_s30 + $0x8] sm:$0xff] }
  0xb4   : > { %v813_v58 = vsub.f32 1.5, %v812_v55 }
  0xb5   : > { %v1735_v59 = vpop.eup %1734  ;;  %1736 = vrsqrt.f32 %v807_v56  ;;  %v808_v60 = vadd.f32 1e-05, %v800_v57  ;;  %vm835_vm10 = vweird.f32 %v807_v56 }
  0xb6   : > { %v820_v61 = vmul.f32 %v1735_v59, %v806_v45  ;;  %v814_v62 = vmul.f32 %v1733_v44, %v813_v58  ;;  %vm826_vm6 = vweird.f32 %v1735_v59  ;;  %890 = vperm.xlu2 %1721, %v876_v54  }
  0xb7   : > { %1738 = vrsqrt.f32 %v808_v60  ;;  %vm827_vm8 = vmor %vm825_vm7, %vm826_vm6  ;;  %vm845_vm13 = vweird.f32 %v808_v60 }
  0xb8   : > { %v821_v0 = vmul.f32 %v1735_v59, %v820_v61  ;;  %v818_v1 = vsel %vm817_vm5, %v1733_v44, %v814_v62  ;;  %v878_v44 = vld [vmem:[%s1968_s30 + $0x18] sm:$0xff]  ;;  %s2276_s30 = scalar_lea.vmem %s2243_s3, %s1940_s26 }
  0xb9   : > { %v849_v3 = vmul.f32 %v818_v1, %v801_v63  ;;  %900 = vperm.xlu0 %1722, %v878_v44  }
  0xba   : > { %v822_v8 = vmul.f32 0.5, %v821_v0 }
  0xbb   : > { %v1737_v10 = vpop.eup %1736  ;;  %v856_v15 = vmul.f32 %v1724_v6, %v849_v3 }
  0xbc   : > { %v823_v12 = vsub.f32 1.5, %v822_v8  ;;  %v830_v13 = vmul.f32 %v1737_v10, %v807_v56  ;;  %vm836_vm9 = vweird.f32 %v1737_v10 }
  0xbd   : > { %v1739_v14 = vpop.eup %1738  ;;  %v863_v25 = vadd.f32 %v1725_v16, %v856_v15  ;;  %vm837_vm12 = vmor %vm835_vm10, %vm836_vm9 }
  0xbe   : > { %v831_v17 = vmul.f32 %v1737_v10, %v830_v13  ;;  %v840_v18 = vmul.f32 %v1739_v14, %v808_v60  ;;  %v824_v19 = vmul.f32 %v1735_v59, %v823_v12  ;;  %vm846_vm11 = vweird.f32 %v1739_v14  ;;  %v1680_v60 = vld [vmem:[%s1963_s15 + $0x8] sm:$0xff] }
  0xbf   : > { %v867_v34 = vpack.c.bf16 %v863_v25, %v863_v25  ;;  %vm847_vm14 = vmor %vm845_vm13, %vm846_vm11 }
  0xc0   : > { %v832_v21 = vmul.f32 0.5, %v831_v17  ;;  %v841_v22 = vmul.f32 %v1739_v14, %v840_v18  ;;  %v828_v23 = vsel %vm827_vm8, %v1735_v59, %v824_v19  ;;  %v881_v59 = vld [vmem:[%s1974_s19] sm:$0xff] }
  0xc1   : > { %v850_v24 = vmul.f32 %v828_v23, %v802_v20  ;;  %v915_v45 = vunpack.c.l.b16 %v867_v34  ;;  %985 = vperm.xlu2 %1721, %v881_v59  }
  0xc2   : > { %v833_v27 = vsub.f32 1.5, %v832_v21  ;;  %v842_v28 = vmul.f32 0.5, %v841_v22 }
  0xc3   : > { %v857_v29 = vmul.f32 %v1724_v6, %v850_v24 }
  0xc4   : > { %v843_v30 = vsub.f32 1.5, %v842_v28  ;;  %v834_v31 = vmul.f32 %v1737_v10, %v833_v27 }
  0xc5   : > { %v864_v33 = vadd.f32 %v1725_v16, %v857_v29 }
  0xc6   : > { %v838_v35 = vsel %vm837_vm12, %v1737_v10, %v834_v31  ;;  %v844_v36 = vmul.f32 %v1739_v14, %v843_v30 }
  0xc7   : > { %v868_v38 = vpack.c.bf16 %v864_v33, %v864_v33  ;;  %v851_v39 = vmul.f32 %v838_v35, %v803_v32 }
  0xc8   : > { %v848_v40 = vsel %vm847_vm14, %v1739_v14, %v844_v36  ;;  %v886_v0 = vpop.permute.xlu1 %885 }
  0xc9   : > { %v916_v41 = vunpack.c.l.b16 %v868_v38  ;;  %v852_v46 = vmul.f32 %v848_v40, %v804_v37  ;;  %v858_v47 = vmul.f32 %v1724_v6, %v851_v39 }
  0xcb   : > { %v917_v49 = vpack.c.b16 %v916_v41, %v915_v45  ;;  %v859_v50 = vmul.f32 %v1724_v6, %v852_v46  ;;  %v865_v43 = vadd.f32 %v1725_v16, %v858_v47 }
  0xcd   : > { %933 = vmatpush.bf16.msra.mxu0 %v917_v49  ;;  %v866_v52 = vadd.f32 %v1725_v16, %v859_v50  ;;  %v869_v53 = vpack.c.bf16 %v865_v43, %v865_v43 }
  0xcf   : > { %v870_v55 = vpack.c.bf16 %v866_v52, %v866_v52  ;;  %v1017_v56 = vunpack.c.l.b16 %v869_v53 }
  0xd0   : > { %1628 = vmatmul.msk.bf16.vlgmr.msra.gmra.mxu0 %vm919_vm15, %v1679_v51 }
  0xd1   : > { %v1018_v57 = vunpack.c.l.b16 %v870_v55 }
  0xd3   : > { %v1019_v58 = vpack.c.b16 %v1018_v57, %v1017_v56 }
  0xd5   : > { %1028 = vmatpush.bf16.msra.mxu2 %v1019_v58 }
  0xd8   : > { %1635 = vmatmul.msk.bf16.vlgmr.msra.gmra.mxu2 %vm919_vm15, %v1679_v51 }
  0xe0   : > { %1629 = vmatmul.msk.bf16.gmra.mxu0 %vm919_vm15, %v1680_v60 }
  0xe8   : > { %1636 = vmatmul.msk.bf16.gmra.mxu2 %vm919_vm15, %v1680_v60 }
 0x108   : > { %v896_v61 = vpop.permute.xlu2 %895 }
 0x110   : > { %v891_v63 = vpop.permute.xlu2 %890 }
 0x12b   : > { %v901_v20 = vpop.permute.xlu0 %900 }
 0x14d   : > { %v935_v62 = vpop.f32.mrf.mxu0 }
 0x14e   : > { %v2088_v3 = vadd.f32 %v935_v62, %v886_v0 }
 0x150   : > { %v945_v7 = vmul.f32 %v2088_v3, %v2088_v3 }
 0x152   : > { %v949_v14 = vmul.f32 %v945_v7, %v2088_v3 }
 0x154   : > { %v953_v18 = vmul.f32 0.044715, %v949_v14 }
 0x155   : > { %v937_v1 = vpop.f32.mrf.mxu0 }
 0x156   : > { %v2086_v2 = vadd.f32 %v937_v1, %v891_v63  ;;  %v957_v29 = vadd.f32 %v953_v18, %v2088_v3 }
 0x158   : > { %v946_v6 = vmul.f32 %v2086_v2, %v2086_v2  ;;  %v961_v37 = vmul.f32 0.7978846, %v957_v29 }
 0x15a   : > { %v950_v12 = vmul.f32 %v946_v6, %v2086_v2 }
 0x15b   : > { %v1030_v8 = vpop.f32.mrf.mxu2 }
 0x15c   : > { %v954_v16 = vmul.f32 0.044715, %v950_v12  ;;  %v2104_v25 = vadd.f32 %v1030_v8, %v886_v0 }
 0x15d   : > { %v940_v10 = vpop.f32.mrf.mxu0 }
 0x15e   : > { %v2095_v13 = vadd.f32 %v940_v10, %v896_v61  ;;  %v958_v24 = vadd.f32 %v954_v16, %v2086_v2  ;;  %v1040_v33 = vmul.f32 %v2104_v25, %v2104_v25 }
 0x160   : > { %v947_v15 = vmul.f32 %v2095_v13, %v2095_v13  ;;  %v962_v35 = vmul.f32 0.7978846, %v958_v24  ;;  %v1044_v42 = vmul.f32 %v1040_v33, %v2104_v25 }
 0x162   : > { %v951_v17 = vmul.f32 %v947_v15, %v2095_v13  ;;  %v1048_v49 = vmul.f32 0.044715, %v1044_v42 }
 0x163   : > { %v1032_v19 = vpop.f32.mrf.mxu2 }
 0x164   : > { %v955_v21 = vmul.f32 0.044715, %v951_v17  ;;  %v2101_v22 = vadd.f32 %v1032_v19, %v891_v63  ;;  %v1052_v57 = vadd.f32 %v1048_v49, %v2104_v25 }
 0x165   : > { %v942_v23 = vpop.f32.mrf.mxu0 }
 0x166   : > { %v959_v27 = vadd.f32 %v955_v21, %v2095_v13  ;;  %v943_v28 = vadd.f32 %v942_v23, %v901_v20  ;;  %v1041_v30 = vmul.f32 %v2101_v22, %v2101_v22  ;;  %v1056_v8 = vmul.f32 0.7978846, %v1052_v57 }
 0x168   : > { %v948_v31 = vmul.f32 %v943_v28, %v943_v28  ;;  %v963_v32 = vmul.f32 0.7978846, %v959_v27  ;;  %v1045_v38 = vmul.f32 %v1041_v30, %v2101_v22 }
 0x16a   : > { %v952_v34 = vmul.f32 %v948_v31, %v943_v28  ;;  %1740 = vtanh.f32 %v963_v32  ;;  %v1049_v41 = vmul.f32 0.044715, %v1045_v38  ;;  %v1681_v31 = vld [vmem:[%s1979_s27] sm:$0xff] }
 0x16b   : > { %v1035_v36 = vpop.f32.mrf.mxu2  ;;  %1742 = vtanh.f32 %v962_v35 }
 0x16c   : > { %v956_v39 = vmul.f32 0.044715, %v952_v34  ;;  %v2113_v40 = vadd.f32 %v1035_v36, %v896_v61  ;;  %1744 = vtanh.f32 %v961_v37  ;;  %v1053_v52 = vadd.f32 %v1049_v41, %v2101_v22 }
 0x16e   : > { %v1042_v44 = vmul.f32 %v2113_v40, %v2113_v40  ;;  %v960_v45 = vadd.f32 %v956_v39, %v943_v28  ;;  %v1057_v63 = vmul.f32 0.7978846, %v1053_v52 }
 0x170   : > { %v1046_v46 = vmul.f32 %v1042_v44, %v2113_v40  ;;  %v964_v47 = vmul.f32 0.7978846, %v960_v45  ;;  %v1741_v48 = vpop.eup %1740  ;;  %v986_v45 = vpop.permute.xlu2 %985 }
 0x171   : > { %v1743_v51 = vpop.eup %1742  ;;  %v971_v55 = vadd.f32 1.0, %v1741_v48 }
 0x172   : > { %v1050_v50 = vmul.f32 0.044715, %v1046_v46  ;;  %1746 = vtanh.f32 %v964_v47  ;;  %v1745_v56 = vpop.eup %1744  ;;  %v970_v60 = vadd.f32 1.0, %v1743_v51 }
 0x173   : > { %v1037_v43 = vpop.f32.mrf.mxu2  ;;  %v975_v1 = vmul.f32 0.5, %v971_v55  ;;  %v969_v6 = vadd.f32 1.0, %v1745_v56 }
 0x174   : > { %v1054_v53 = vadd.f32 %v1050_v50, %v2113_v40  ;;  %v1038_v54 = vadd.f32 %v1037_v43, %v901_v20  ;;  %v974_v12 = vmul.f32 0.5, %v970_v60 }
 0x175   : > { %v979_v15 = vmul.f32 %v975_v1, %v2095_v13  ;;  %v973_v17 = vmul.f32 0.5, %v969_v6  ;;  %v1683_v6 = vld [vmem:[%s1984_s23 + $0x8] sm:$0xff] }
 0x176   : > { %v1043_v58 = vmul.f32 %v1038_v54, %v1038_v54  ;;  %v1058_v59 = vmul.f32 0.7978846, %v1054_v53  ;;  %v978_v20 = vmul.f32 %v974_v12, %v2086_v2  ;;  %1242 = vmatpush.bf16.msra.mxu1 %v1683_v6 }
 0x177   : > { %v977_v23 = vmul.f32 %v973_v17, %v2088_v3 }
 0x178   : > { %v1747_v61 = vpop.eup %1746  ;;  %v1047_v62 = vmul.f32 %v1043_v58, %v1038_v54  ;;  %1748 = vtanh.f32 %v1058_v59 }
 0x179   : > { %v972_v0 = vadd.f32 1.0, %v1747_v61  ;;  %1750 = vtanh.f32 %v1057_v63  ;;  %v981_v27 = vpack.c.bf16 %v978_v20, %v977_v23 }
 0x17a   : > { %v1051_v7 = vmul.f32 0.044715, %v1047_v62  ;;  %1752 = vtanh.f32 %v1056_v8 }
 0x17b   : > { %v976_v10 = vmul.f32 0.5, %v972_v0 }
 0x17c   : > { %v1055_v14 = vadd.f32 %v1051_v7, %v1038_v54 }
 0x17d   : > { %v980_v16 = vmul.f32 %v976_v10, %v943_v28  ;;  %v1682_v10 = vld [vmem:[%s1984_s23] sm:$0xff] }
 0x17e   : > { %v1059_v18 = vmul.f32 0.7978846, %v1055_v14  ;;  %v1749_v21 = vpop.eup %1748  ;;  %1243 = vmatpush.bf16.msra.mxu1 %v1682_v10 }
 0x17f   : > { %v982_v19 = vpack.c.bf16 %v980_v16, %v979_v15  ;;  %v1751_v24 = vpop.eup %1750  ;;  %v1066_v29 = vadd.f32 1.0, %v1749_v21 }
 0x180   : > { %1754 = vtanh.f32 %v1059_v18  ;;  %v1753_v30 = vpop.eup %1752  ;;  %v1065_v32 = vadd.f32 1.0, %v1751_v24 }
 0x181   : > { %1007 = vmatpush.bf16.msrb.mxu0 %v982_v19  ;;  %v1070_v33 = vmul.f32 0.5, %v1066_v29  ;;  %v1064_v34 = vadd.f32 1.0, %v1753_v30 }
 0x182   : > { %v1069_v2 = vmul.f32 0.5, %v1065_v32 }
 0x183   : > { %v1074_v36 = vmul.f32 %v1070_v33, %v2113_v40  ;;  %v1068_v38 = vmul.f32 0.5, %v1064_v34 }
 0x184   : > { %v1073_v39 = vmul.f32 %v1069_v2, %v2101_v22 }
 0x185   : > { %1008 = vmatpush.bf16.msrb.mxu0 %v981_v27  ;;  %v1072_v42 = vmul.f32 %v1068_v38, %v2104_v25  ;;  %v991_v25 = vpop.permute.xlu1 %990 }
 0x186   : > { %v1755_v13 = vpop.eup %1754 }
 0x187   : > { %v1067_v28 = vadd.f32 1.0, %v1755_v13  ;;  %v1076_v44 = vpack.c.bf16 %v1073_v39, %v1072_v42 }
 0x188   : > { %1634 = vmatmul.msk.bf16.vlgmr.msrb.gmra.mxu0 %vm749_vm1, %v1681_v31 }
 0x189   : > { %v1071_v35 = vmul.f32 0.5, %v1067_v28 }
 0x18b   : > { %v1075_v37 = vmul.f32 %v1071_v35, %v1038_v54 }
 0x18d   : > { %v1077_v3 = vpack.c.bf16 %v1075_v37, %v1074_v36 }
 0x18f   : > { %1084 = vmatpush.bf16.msrb.mxu2 %v1077_v3 }
 0x193   : > { %1085 = vmatpush.bf16.msrb.mxu2 %v1076_v44 }
 0x196   : > { %1637 = vmatmul.msk.bf16.vlgmr.msrb.gmra.mxu2 %vm749_vm1, %v1681_v31 }
 0x205   : > { %v1010_v41 = vpop.f32.mrf.mxu0 }
 0x206   : > { %v1011_v46 = vadd.f32 %v1010_v41, %v986_v45 }
 0x208   : > { %v2132_v47 = vadd.f32 %v1011_v46, %v2012_v4 }
 0x20a   : > { %v1098_v40 = vsel %vm749_vm1, %v2132_v47, 0.0  ;;  %v1114_v48 = vmul.f32 %v2132_v47, %v2132_v47 }
 0x20b   : > { %1099 = vadd.xlane.f32.xlu2 %v1098_v40 }
 0x20c   : > { %v1118_v22 = vsel %vm749_vm1, %v1114_v48, 0.0 }
 0x20d   : > { %v1012_v49 = vpop.f32.mrf.mxu0  ;;  %1119 = vadd.xlane.f32.xlu0 %v1118_v22  ;;  %v1726_v22 = vld [vmem:[%s2276_s30] ss:$0 sm:$0xff] }
 0x20e   : > { %v1013_v50 = vadd.f32 %v1012_v49, %v991_v25 }
 0x210   : > { %v2140_v43 = vadd.f32 %v1013_v50, %v2022_v9 }
 0x212   : > { %v1101_v4 = vsel %vm749_vm1, %v2140_v43, 0.0  ;;  %v1115_v51 = vmul.f32 %v2140_v43, %v2140_v43 }
 0x213   : > { %1102 = vadd.xlane.f32.xlu1 %v1101_v4 }
 0x214   : > { %v1121_v52 = vsel %vm749_vm1, %v1115_v51, 0.0 }
 0x215   : > { %1122 = vadd.xlane.f32.xlu2 %v1121_v52 }
 0x219   : > { %v1087_v53 = vpop.f32.mrf.mxu2 }
 0x21a   : > { %v1088_v54 = vadd.f32 %v1087_v53, %v986_v45 }
 0x21c   : > { %v2148_v55 = vadd.f32 %v1088_v54, %v2014_v5 }
 0x21e   : > { %v1104_v56 = vsel %vm749_vm1, %v2148_v55, 0.0  ;;  %v1116_v9 = vmul.f32 %v2148_v55, %v2148_v55 }
 0x21f   : > { %1105 = vadd.xlane.f32.xlu1 %v1104_v56 }
 0x220   : > { %v1124_v57 = vsel %vm749_vm1, %v1116_v9, 0.0 }
 0x221   : > { %v1089_v58 = vpop.f32.mrf.mxu2  ;;  %1125 = vadd.xlane.f32.xlu0 %v1124_v57 }
 0x222   : > { %v1090_v59 = vadd.f32 %v1089_v58, %v991_v25 }
 0x224   : > { %v2156_v60 = vadd.f32 %v1090_v59, %v2025_v11 }
 0x226   : > { %v1107_v5 = vsel %vm749_vm1, %v2156_v60, 0.0  ;;  %v1117_v61 = vmul.f32 %v2156_v60, %v2156_v60 }
 0x227   : > { %1108 = vadd.xlane.f32.xlu2 %v1107_v5 }
 0x228   : > { %v1127_v62 = vsel %vm749_vm1, %v1117_v61, 0.0 }
 0x229   : > { %1128 = vadd.xlane.f32.xlu1 %v1127_v62 }
 0x27e   : > { %v1100_v63 = vpop.xlane.xlu2 %1099 }
 0x27f   : > { %v1110_v0 = vmul.f32 %v1100_v63, %v2040_v26 }
 0x280   : > { %v1120_v1 = vpop.xlane.xlu0 %1119 }
 0x281   : > { %v1134_v7 = vmul.f32 %v1110_v0, %v1110_v0  ;;  %v1130_v8 = vmul.f32 %v1120_v1, %v2040_v26  ;;  %v1142_v42 = vsub.f32 %v2132_v47, %v1110_v0 }
 0x283   : > { %v1138_v11 = vsub.f32 %v1130_v8, %v1134_v7 }
 0x285   : > { %v1146_v12 = vadd.f32 1e-05, %v1138_v11 }
 0x286   : > { %v1103_v14 = vpop.xlane.xlu1 %1102 }
 0x287   : > { %1756 = vrsqrt.f32 %v1146_v12  ;;  %v1111_v15 = vmul.f32 %v1103_v14, %v2040_v26  ;;  %vm1156_vm2 = vweird.f32 %v1146_v12 }
 0x288   : > { %v1123_v16 = vpop.xlane.xlu2 %1122 }
 0x289   : > { %v1135_v17 = vmul.f32 %v1111_v15, %v1111_v15  ;;  %v1131_v18 = vmul.f32 %v1123_v16, %v2040_v26  ;;  %v1143_v49 = vsub.f32 %v2140_v43, %v1111_v15 }
 0x28b   : > { %v1139_v19 = vsub.f32 %v1131_v18, %v1135_v17 }
 0x28d   : > { %v1757_v20 = vpop.eup %1756  ;;  %v1147_v21 = vadd.f32 1e-05, %v1139_v19 }
 0x28e   : > { %v1151_v23 = vmul.f32 %v1757_v20, %v1146_v12  ;;  %vm1157_vm0 = vweird.f32 %v1757_v20 }
 0x28f   : > { %1758 = vrsqrt.f32 %v1147_v21  ;;  %vm1158_vm3 = vmor %vm1156_vm2, %vm1157_vm0  ;;  %vm1166_vm5 = vweird.f32 %v1147_v21 }
 0x290   : > { %v1152_v24 = vmul.f32 %v1757_v20, %v1151_v23 }
 0x292   : > { %v1153_v27 = vmul.f32 0.5, %v1152_v24  ;;  %v1106_v29 = vpop.xlane.xlu1 %1105  ;;  %v1685_v24 = vld [vmem:[%s1993_s17 + $0x8] sm:$0xff] }
 0x293   : > { %v1112_v30 = vmul.f32 %v1106_v29, %v2040_v26  ;;  %1325 = vmatpush.bf16.msra.mxu3 %v1685_v24  ;;  %v1684_v29 = vld [vmem:[%s1993_s17] sm:$0xff] }
 0x294   : > { %v1154_v31 = vsub.f32 1.5, %v1153_v27  ;;  %v1126_v32 = vpop.xlane.xlu0 %1125  ;;  %v1728_v27 = vld [vmem:[%s720_s22] ss:$0 sm:$0xff] }
 0x295   : > { %v1759_v13 = vpop.eup %1758  ;;  %v1136_v28 = vmul.f32 %v1112_v30, %v1112_v30  ;;  %v1132_v33 = vmul.f32 %v1126_v32, %v2040_v26  ;;  %v1144_v11 = vsub.f32 %v2148_v55, %v1112_v30 }
 0x296   : > { %v1155_v34 = vmul.f32 %v1757_v20, %v1154_v31  ;;  %v1161_v35 = vmul.f32 %v1759_v13, %v1147_v21  ;;  %vm1167_vm4 = vweird.f32 %v1759_v13 }
 0x297   : > { %v1140_v2 = vsub.f32 %v1132_v33, %v1136_v28  ;;  %vm1168_vm6 = vmor %vm1166_vm5, %vm1167_vm4  ;;  %1326 = vmatpush.bf16.msra.mxu3 %v1684_v29 }
 0x298   : > { %v1162_v36 = vmul.f32 %v1759_v13, %v1161_v35  ;;  %v1159_v38 = vsel %vm1158_vm3, %v1757_v20, %v1155_v34 }
 0x299   : > { %v1148_v37 = vadd.f32 1e-05, %v1140_v2  ;;  %v1190_v48 = vmul.f32 %v1159_v38, %v1142_v42 }
 0x29a   : > { %v1163_v3 = vmul.f32 0.5, %v1162_v36  ;;  %v1109_v39 = vpop.xlane.xlu2 %1108 }
 0x29b   : > { %1760 = vrsqrt.f32 %v1148_v37  ;;  %v1113_v44 = vmul.f32 %v1109_v39, %v2040_v26  ;;  %v1197_v54 = vmul.f32 %v1726_v22, %v1190_v48  ;;  %vm1176_vm8 = vweird.f32 %v1148_v37 }
 0x29c   : > { %v1164_v45 = vsub.f32 1.5, %v1163_v3  ;;  %v1129_v41 = vpop.xlane.xlu1 %1128 }
 0x29d   : > { %v1137_v46 = vmul.f32 %v1113_v44, %v1113_v44  ;;  %v1133_v40 = vmul.f32 %v1129_v41, %v2040_v26  ;;  %v1727_v26 = vld [vmem:[%s2277_s13] ss:$0 sm:$0xff]  ;;  %v1145_v15 = vsub.f32 %v2156_v60, %v1113_v44 }
 0x29e   : > { %v1165_v25 = vmul.f32 %v1759_v13, %v1164_v45  ;;  %v1204_v58 = vadd.f32 %v1727_v26, %v1197_v54 }
 0x29f   : > { %v1141_v50 = vsub.f32 %v1133_v40, %v1137_v46 }
 0x2a0   : > { %v1169_v4 = vsel %vm1168_vm6, %v1759_v13, %v1165_v25 }
 0x2a1   : > { %v1761_v51 = vpop.eup %1760  ;;  %v1149_v52 = vadd.f32 1e-05, %v1141_v50  ;;  %v1191_v53 = vmul.f32 %v1169_v4, %v1143_v49 }
 0x2a2   : > { %v1171_v56 = vmul.f32 %v1761_v51, %v1148_v37  ;;  %vm1177_vm7 = vweird.f32 %v1761_v51 }
 0x2a3   : > { %1762 = vrsqrt.f32 %v1149_v52  ;;  %v1198_v9 = vmul.f32 %v1726_v22, %v1191_v53  ;;  %vm1178_vm9 = vmor %vm1176_vm8, %vm1177_vm7  ;;  %vm1186_vm11 = vweird.f32 %v1149_v52 }
 0x2a4   : > { %v1172_v57 = vmul.f32 %v1761_v51, %v1171_v56 }
 0x2a5   : > { %v1205_v59 = vadd.f32 %v1727_v26, %v1198_v9 }
 0x2a6   : > { %v1173_v5 = vmul.f32 0.5, %v1172_v57 }
 0x2a7   : > { %v1208_v61 = vpack.c.bf16 %v1205_v59, %v1204_v58 }
 0x2a8   : > { %v1174_v62 = vsub.f32 1.5, %v1173_v5 }
 0x2a9   : > { %v1763_v63 = vpop.eup %1762  ;;  %1646 = vmatmul.msk.bf16.vlgmr.msra.gmra.mxu1 %vm749_vm1, %v1208_v61 }
 0x2aa   : > { %v1175_v0 = vmul.f32 %v1761_v51, %v1174_v62  ;;  %v1181_v1 = vmul.f32 %v1763_v63, %v1149_v52  ;;  %vm1187_vm10 = vweird.f32 %v1763_v63 }
 0x2ab   : > { %vm1188_vm12 = vmor %vm1186_vm11, %vm1187_vm10 }
 0x2ac   : > { %v1182_v6 = vmul.f32 %v1763_v63, %v1181_v1  ;;  %v1179_v7 = vsel %vm1178_vm9, %v1761_v51, %v1175_v0 }
 0x2ad   : > { %v1192_v12 = vmul.f32 %v1179_v7, %v1144_v11 }
 0x2ae   : > { %v1183_v8 = vmul.f32 0.5, %v1182_v6 }
 0x2af   : > { %v1199_v18 = vmul.f32 %v1726_v22, %v1192_v12 }
 0x2b0   : > { %v1184_v10 = vsub.f32 1.5, %v1183_v8 }
 0x2b1   : > { %v1206_v20 = vadd.f32 %v1727_v26, %v1199_v18 }
 0x2b2   : > { %v1185_v14 = vmul.f32 %v1763_v63, %v1184_v10  ;;  %v1729_v10 = vld [vmem:[%s728_s24] ss:$0 sm:$0xff] }
 0x2b4   : > { %v1189_v16 = vsel %vm1188_vm12, %v1763_v63, %v1185_v14 }
 0x2b5   : > { %v1193_v17 = vmul.f32 %v1189_v16, %v1145_v15 }
 0x2b7   : > { %v1200_v19 = vmul.f32 %v1726_v22, %v1193_v17 }
 0x2b9   : > { %v1207_v21 = vadd.f32 %v1727_v26, %v1200_v19 }
 0x2bb   : > { %v1209_v23 = vpack.c.bf16 %v1207_v21, %v1206_v20 }
 0x2bd   : > { %1647 = vmatmul.msk.bf16.gmra.mxu1 %vm749_vm1, %v1209_v23 }
 0x326   : > { %v1245_v30 = vpop.f32.mrf.mxu1 }
 0x327   : > { %v1246_v31 = vadd.f32 %v1728_v27, %v1245_v30 }
 0x329   : > { %v1255_v32 = vmul.f32 %v1246_v31, %v1246_v31 }
 0x32b   : > { %v1259_v13 = vmul.f32 %v1255_v32, %v1246_v31 }
 0x32d   : > { %v1263_v28 = vmul.f32 0.044715, %v1259_v13 }
 0x32e   : > { %v1247_v33 = vpop.f32.mrf.mxu1 }
 0x32f   : > { %v1267_v34 = vadd.f32 %v1263_v28, %v1246_v31  ;;  %v1248_v35 = vadd.f32 %v1728_v27, %v1247_v33 }
 0x331   : > { %v1271_v2 = vmul.f32 0.7978846, %v1267_v34  ;;  %v1256_v36 = vmul.f32 %v1248_v35, %v1248_v35 }
 0x333   : > { %v1260_v37 = vmul.f32 %v1256_v36, %v1248_v35  ;;  %1764 = vtanh.f32 %v1271_v2 }
 0x335   : > { %v1264_v38 = vmul.f32 0.044715, %v1260_v37 }
 0x337   : > { %v1268_v3 = vadd.f32 %v1264_v38, %v1248_v35 }
 0x339   : > { %v1272_v39 = vmul.f32 0.7978846, %v1268_v3  ;;  %v1765_v44 = vpop.eup %1764 }
 0x33a   : > { %v1250_v42 = vpop.f32.mrf.mxu1  ;;  %v1279_v46 = vadd.f32 1.0, %v1765_v44 }
 0x33b   : > { %1766 = vtanh.f32 %v1272_v39  ;;  %v1251_v45 = vadd.f32 %v1728_v27, %v1250_v42 }
 0x33c   : > { %v1283_v50 = vmul.f32 0.5, %v1279_v46 }
 0x33d   : > { %v1257_v41 = vmul.f32 %v1251_v45, %v1251_v45 }
 0x33e   : > { %v1287_v26 = vmul.f32 %v1283_v50, %v1246_v31 }
 0x33f   : > { %v1261_v40 = vmul.f32 %v1257_v41, %v1251_v45 }
 0x341   : > { %v1767_v48 = vpop.eup %1766  ;;  %v1265_v22 = vmul.f32 0.044715, %v1261_v40 }
 0x342   : > { %v1252_v25 = vpop.f32.mrf.mxu1  ;;  %v1280_v49 = vadd.f32 1.0, %v1767_v48 }
 0x343   : > { %v1269_v4 = vadd.f32 %v1265_v22, %v1251_v45  ;;  %v1253_v51 = vadd.f32 %v1728_v27, %v1252_v25 }
 0x344   : > { %v1284_v52 = vmul.f32 0.5, %v1280_v49 }
 0x345   : > { %v1273_v53 = vmul.f32 0.7978846, %v1269_v4  ;;  %v1258_v54 = vmul.f32 %v1253_v51, %v1253_v51 }
 0x346   : > { %v1288_v56 = vmul.f32 %v1284_v52, %v1248_v35 }
 0x347   : > { %v1262_v9 = vmul.f32 %v1258_v54, %v1253_v51  ;;  %1768 = vtanh.f32 %v1273_v53 }
 0x348   : > { %v1291_v57 = vpack.c.bf16 %v1288_v56, %v1287_v26 }
 0x349   : > { %v1266_v58 = vmul.f32 0.044715, %v1262_v9 }
 0x34a   : > { %1656 = vmatmul.msk.bf16.vlgmr.msra.gmra.mxu3 %vm749_vm1, %v1291_v57 }
 0x34b   : > { %v1270_v59 = vadd.f32 %v1266_v58, %v1253_v51 }
 0x34d   : > { %v1274_v5 = vmul.f32 0.7978846, %v1270_v59  ;;  %v1769_v61 = vpop.eup %1768 }
 0x34e   : > { %v1281_v62 = vadd.f32 1.0, %v1769_v61 }
 0x34f   : > { %1770 = vtanh.f32 %v1274_v5 }
 0x350   : > { %v1285_v1 = vmul.f32 0.5, %v1281_v62 }
 0x352   : > { %v1289_v7 = vmul.f32 %v1285_v1, %v1251_v45 }
 0x355   : > { %v1771_v63 = vpop.eup %1770 }
 0x356   : > { %v1282_v0 = vadd.f32 1.0, %v1771_v63 }
 0x358   : > { %v1286_v6 = vmul.f32 0.5, %v1282_v0 }
 0x35a   : > { %v1290_v8 = vmul.f32 %v1286_v6, %v1253_v51 }
 0x35c   : > { %v1292_v11 = vpack.c.bf16 %v1290_v8, %v1289_v7 }
 0x35e   : > { %1657 = vmatmul.msk.bf16.gmra.mxu3 %vm749_vm1, %v1292_v11 }
 0x3cd   : > { %v1328_v12 = vpop.f32.mrf.mxu3 }
 0x3ce   : > { %v1329_v14 = vadd.f32 %v1729_v10, %v1328_v12 }
 0x3d0   : > { %v1338_v15 = vadd.f32 %v1329_v14, %v2132_v47 }
 0x3d2   : > { %1342 = vst.msk [vmem:[#allocation2] sm:$0xff] %vm749_vm1, %v1338_v15 }
 0x3d5   : > { %v1330_v16 = vpop.f32.mrf.mxu3 }
 0x3d6   : > { %v1331_v17 = vadd.f32 %v1729_v10, %v1330_v16 }
 0x3d8   : > { %v1339_v18 = vadd.f32 %v1331_v17, %v2140_v43 }
 0x3da   : > { %1343 = vst.msk [vmem:[#allocation2 + $0x8] sm:$0xff] %vm749_vm1, %v1339_v18 }
 0x3e1   : > { %v1333_v19 = vpop.f32.mrf.mxu3 }
 0x3e2   : > { %v1334_v20 = vadd.f32 %v1729_v10, %v1333_v19 }
 0x3e4   : > { %v1340_v21 = vadd.f32 %v1334_v20, %v2148_v55 }
 0x3e6   : > { %1344 = vst.msk [vmem:[#allocation2 + $0x10] sm:$0xff] %vm749_vm1, %v1340_v21 }
 0x3e9   : > { %v1335_v23 = vpop.f32.mrf.mxu3 }
 0x3ea   : > { %v1336_v24 = vadd.f32 %v1729_v10, %v1335_v23  ;;  %1349 = sbr.rel (%p1658_p6) target bundleno = 1276 (0x4fc), region = 92 }
 0x3ec   : > { %v1341_v27 = vadd.f32 %v1336_v24, %v2156_v60 }
 0x3ee   : > { %1345 = vst.msk [vmem:[#allocation2 + $0x18] sm:$0xff] %vm749_vm1, %v1341_v27 }
 0x3ef   : > { %1366 = vmatpush.msra.mxu0 %v1341_v27  ;;  %v1687_v47 = vld [vmem:[%s2254_s14 + $0x8] sm:$0xff]  ;;  %v1350_v43 = vld [vmem:[%s2278_s18] sm:$0x3] }
 0x3f0   : > { %1404 = vmatpush.bf16.msra.mxu1 %v1687_v47  ;;  %v1686_v55 = vld [vmem:[%s2254_s14] sm:$0xff] }
 0x3f1   : > { %1367 = vmatpush.msra.mxu0 %v1340_v21  ;;  %v1772_v30 = vld [vmem:[%s2279_s5] ss:$0 sm:$0xff] }
 0x3f3   : > { %1368 = vmatpush.msra.mxu0 %v1339_v18 }
 0x3f4   : > { %1405 = vmatpush.bf16.msra.mxu1 %v1686_v55 }
 0x3f5   : > { %1369 = vmatpush.msra.mxu0 %v1338_v15 }
 0x3f6   : > { %1659 = vmatmul.msk.f32.vlgmr.msra.gmra.mxu0 %vm749_vm1, %v1350_v43 }
 0x473   : > { %v1371_v60 = vpop.f32.mrf.mxu0 }
 0x474   : > { %v1374_v29 = vpack.c.bf16 %v1371_v60, %v1371_v60 }
 0x476   : > { %1668 = vmatmul.msk.bf16.vlgmr.msra.gmra.mxu1 %vm749_vm1, %v1374_v29 }
 0x4f3   : > { %v1407_v31 = vpop.f32.mrf.mxu1 }
 0x4f4   : > { %v1408_v32 = vadd.f32 %v1772_v30, %v1407_v31 }
 0x4f6   : > { %1411 = vst [vmem:[#allocation3] sm:$0x3] %v1408_v32 }
 0x4fb   : > { %v1409_v13 = vpop.f32.mrf.mxu1 }
 0x4fc PF: > { %s2280_s15 = sld [smem:[#allocation7_spill]]  ;;  %s1831_s6 = smov [#allocation3]  }
 0x4fd   : > { %s2282_s23 = sld [smem:[#allocation15_spill]]  ;;  %s1420_s28 = sshll.u32 %s1831_s6, 4  ;;  %s1421_s28 = int_to_ptr.vmem [resolvable:$true] %s1420_s28 }
 0x502   : > { %s2281_s27 = sadd.s32 4294967295, %s2280_s15  }
 0x503   : > { %p1692_p7 = scmp.eq.s32.totalorder %s2281_s27, 1  ;;  %s1422_s13 = sshll.u32 %s2282_s23, 4  ;;  %s1423_s13 = int_to_ptr.hbm [resolvable:$true] %s1422_s13 }
 0x505   : > { %1689 = dma.vmem_to_hbm [thread:$0]  (%p1692_p7), %s1421_s28, 32, %s1423_s13, [#allocation4]  }
 0x506   : > { %1814 = dma.done.wait (%p1692_p7), [#allocation4], 32  }
 0x507   : > { %1816 = vsyncadd (%p1692_p7), [#allocation4], 4294967264 }
 0x508 PF: > { %s2283_s22 = sld [smem:[#allocation7_spill]] }
 0x509   : > { %s2284_s21 = sld [smem:[#allocation6_spill]] }
 0x50e   : > { %s27_s23 = sadd.s32 1, %s2283_s22   ;;  %s2285_s22 = sld [smem:[#allocation8_spill]] }
 0x50f   : > { %p24_p8 = scmp.ge.s32.totalorder %s27_s23, 4  }
 0x511   :  { %26 = sbr.rel (!%p24_p8) target bundleno = 10 (0xa), region = 156 }
 0x516   :  { %1436 = vsyncpa [#allocation4], 1 }
 0x517   :  { %1438 = vsyncpa [#allocation4 + $0x1], 1 }

</bundles_post_ra>
